<compile_context>
chip_gen: v7x
topology: tpu7x:2x2x1
jax: 0.10.0
libtpu: 0.0.40
codegen_flags: <defaults>
</compile_context>

<pallas_src>
import functools
import math

import jax
import jax.numpy as jnp
from jax import lax
from jax.experimental import pallas as pl
from jax.experimental.pallas import tpu as pltpu


# ----------------------------- Pallas kernel -----------------------------

def _gated_conv_kernel(x_ref, w_ref, b_ref, out_ref, *,
                       cout, kh, kw, img_h, img_w, dilation, padding,
                       approx_sigmoid):
    # x_ref  : (C_in, TM)              input tile; lanes = whole flattened images
    # w_ref  : (KH*KW, 2*C_out, C_in)  per-tap fused [Wh; Wg] weights (f32)
    # b_ref  : (2*C_out, 1)            fused [bh; bg] bias (f32)
    # out_ref: (C_out, TM)             lane-dense gated output tile
    cin, tm = x_ref.shape
    hw = img_h * img_w

    # The stream dtype (f32 / bf16) only affects the HBM/VMEM copy; all
    # in-kernel math is f32 (f32 MXU accumulate, f32 epilogue).
    x = x_ref[...].astype(jnp.float32)

    # Per-lane pixel coordinates.  Blocks hold whole images, so lane l is pixel
    # (y, xc) = ((l % hw) // W, l % W) of some image in the block.  Power-of-two
    # spatial sizes (the common case, incl. the demo) use only and/shift VPU
    # bit ops; otherwise fall back to integer div/mod.
    lane = lax.broadcasted_iota(jnp.int32, (1, tm), 1)
    pix = (lane & (hw - 1)) if (hw & (hw - 1)) == 0 else (lane % hw)
    if (img_w & (img_w - 1)) == 0:
        ypos = pix >> (img_w.bit_length() - 1)
    else:
        ypos = pix // img_w
    xpos = pix - ypos * img_w

    # f32 accumulator initialized with the fused bias (no separate epilogue add).
    acc = jnp.broadcast_to(b_ref[...], (2 * cout, tm))

    # KH*KW taps: static lane rotate + boundary mask + tiny MXU dot.
    # pltpu.roll matches jnp.roll: out[..., i] = x[..., (i - shift) % tm], so
    # shift = (-delta) % tm gives out[..., m] = x[..., m + delta] at every
    # unmasked lane; roll wrap-around only ever lands on masked lanes because
    # blocks contain whole images.
    for t in range(kh * kw):
        dy = (t // kw) * dilation - padding
        dx = (t % kw) * dilation - padding
        delta = dy * img_w + dx
        shift = (-delta) % tm
        shifted = x if shift == 0 else pltpu.roll(x, shift=shift, axis=1)
        valid = ((ypos >= -dy) & (ypos < img_h - dy) &
                 (xpos >= -dx) & (xpos < img_w - dx))
        tap = jnp.where(valid, shifted, 0.0)                      # (C_in, TM)
        acc = acc + jnp.dot(w_ref[t].astype(jnp.float32), tap,
                            preferred_element_type=jnp.float32)   # (2*C_out, TM)

    # h/g split: sublane-aligned when C_out % 8 == 0 (true here, C_out=8);
    # still correct otherwise, merely a cross-sublane (XLU) slice.
    h_pre = acc[:cout, :]
    g_pre = acc[cout:, :]
    # activation is None in the reference config -> h passes through.
    gate = pl.reciprocal(1.0 + jnp.exp(-g_pre), approx=approx_sigmoid)
    out_ref[...] = (h_pre * gate).astype(out_ref.dtype)


# ----------------------------- host-side glue -----------------------------

def _round_up(x, mult):
    return ((x + mult - 1) // mult) * mult


def _choose_images_per_block(n, hw, target_lanes):
    """How many whole images share one lane tile (TM = ipb * hw)."""
    # Smallest image count whose lane tile is a multiple of 128 (dense stores);
    # if that granule would force absurd batch padding, use one full-width
    # block instead (full-extent last dim is exempt from the 128 rule).
    step = 128 // math.gcd(hw, 128)
    if step > max(2 * n, 1):
        return n
    ipb = max(step, (target_lanes // hw) // step * step)
    # v7x megacore: keep >= ~8 grid steps (>=4 per TensorCore) when the batch
    # is large enough to allow it.
    if n >= 8 * step:
        ipb = min(ipb, max(step, (n // 8) // step * step))
    return min(ipb, _round_up(n, step))


@functools.partial(
    jax.jit,
    static_argnames=("stride", "padding", "dilation", "target_block_lanes",
                     "compute_dtype", "approx_sigmoid"))
def gated_conv2d(x_nchw, wh, bh, wg, bg, *, stride=1, padding=1, dilation=1,
                 target_block_lanes=2048, compute_dtype=jnp.float32,
                 approx_sigmoid=False):
    """x_nchw: (N, C_in, H, W); wh/wg: (C_out, C_in, KH, KW); bh/bg: (C_out,)."""
    n, cin, img_h, img_w = x_nchw.shape
    cout, _, kh, kw = wh.shape
    hout = (img_h + 2 * padding - dilation * (kh - 1) - 1) // stride + 1
    wout = (img_w + 2 * padding - dilation * (kw - 1) - 1) // stride + 1
    if stride != 1 or (hout, wout) != (img_h, img_w):
        # TODO(synk): general stride / non-"same" padding needs a gather or
        # haloed-row-tile variant of the kernel.
        raise NotImplementedError(
            "gated_conv2d fused kernel supports stride-1 'same' convs only")

    hw = img_h * img_w
    ipb = _choose_images_per_block(n, hw, target_block_lanes)
    n_pad = _round_up(n, ipb)
    tm = ipb * hw
    m = n * hw
    m_pad = n_pad * hw
    grid = n_pad // ipb

    # Only host-side prep: cast x (x-sized, not patch-sized), pad the batch to
    # a whole number of blocks, relayout channel-major so the flattened
    # batch/spatial index is the lane axis.
    x_c = x_nchw.astype(compute_dtype)
    if n_pad != n:
        x_c = jnp.pad(x_c, ((0, n_pad - n), (0, 0), (0, 0), (0, 0)))
    x_flat = jnp.transpose(x_c, (1, 0, 2, 3)).reshape(cin, m_pad)

    # Fused per-tap weights: tap t = i*KW + j holds [Wh; Wg][:, :, i, j], the
    # (2*C_out, C_in) matrix applied to the input shifted by
    # (i*dil - pad, j*dil - pad).  Weights/bias stay f32 (tiny stream).
    w_all = jnp.concatenate([wh, wg], axis=0)            # (2*C_out, C_in, KH, KW)
    w_taps = jnp.transpose(w_all, (2, 3, 0, 1)).reshape(
        kh * kw, 2 * cout, cin).astype(jnp.float32)
    b_fused = jnp.concatenate([bh, bg]).reshape(2 * cout, 1).astype(jnp.float32)

    kernel = functools.partial(
        _gated_conv_kernel, cout=cout, kh=kh, kw=kw, img_h=img_h, img_w=img_w,
        dilation=dilation, padding=padding, approx_sigmoid=approx_sigmoid)

    in_itemsize = jnp.dtype(compute_dtype).itemsize
    cost = pl.CostEstimate(
        flops=2 * (2 * cout) * (cin * kh * kw) * m_pad,
        transcendentals=cout * m_pad,
        bytes_accessed=(cin * m_pad * in_itemsize          # x stream
                        + kh * kw * 2 * cout * cin * 4     # weights
                        + 2 * cout * 4                     # bias
                        + cout * m_pad * 4))               # output

    out_flat = pl.pallas_call(
        kernel,
        out_shape=jax.ShapeDtypeStruct((cout, m_pad), jnp.float32),
        grid_spec=pltpu.PrefetchScalarGridSpec(
            num_scalar_prefetch=0,
            grid=(grid,),
            in_specs=[
                pl.BlockSpec((cin, tm), lambda i: (0, i)),                    # x tile
                pl.BlockSpec((kh * kw, 2 * cout, cin), lambda i: (0, 0, 0)),  # weights
                pl.BlockSpec((2 * cout, 1), lambda i: (0, 0)),                # bias
            ],
            out_specs=pl.BlockSpec((cout, tm), lambda i: (0, i)),
        ),
        compiler_params=pltpu.CompilerParams(
            dimension_semantics=("parallel",),
            vmem_limit_bytes=32 * 1024 * 1024,
        ),
        cost_estimate=cost,
    )(x_flat, w_taps, b_fused)

    # (C_out, M) -> NCHW (PyTorch convention), dropping batch-padding lanes.
    out = out_flat[:, :m].reshape(cout, n, hout, wout)
    return jnp.transpose(out, (1, 0, 2, 3))


# ----------------------------- reference (plain JAX) -----------------------------

def gated_conv2d_ref(x_nchw, wh, bh, wg, bg, *, stride=1, padding=1, dilation=1):
    dn = lax.conv_dimension_numbers(x_nchw.shape, wh.shape, ("NCHW", "OIHW", "NCHW"))
    conv = lambda w: lax.conv_general_dilated(
        x_nchw, w, window_strides=(stride, stride),
        padding=[(padding, padding), (padding, padding)],
        rhs_dilation=(dilation, dilation), dimension_numbers=dn)
    h = conv(wh) + bh[None, :, None, None]
    g = conv(wg) + bg[None, :, None, None]
    return h * jax.nn.sigmoid(g)


if __name__ == "__main__":
    # Module config: GatedConv2d(input_channels=4, output_channels=8,
    #                            kernel_size=3, stride=1, padding=1)
    N, C_IN, H, W = 2, 4, 16, 16
    C_OUT, KH, KW = 8, 3, 3

    key = jax.random.PRNGKey(0)
    kx, kwh, kbh, kwg, kbg = jax.random.split(key, 5)
    x = jax.random.normal(kx, (N, C_IN, H, W), dtype=jnp.float32)

    # Deterministic parameter init (PyTorch-style uniform bound 1/sqrt(fan_in)).
    fan_in = C_IN * KH * KW
    bound = 1.0 / (fan_in ** 0.5)
    wh = jax.random.uniform(kwh, (C_OUT, C_IN, KH, KW), jnp.float32, -bound, bound)
    bh = jax.random.uniform(kbh, (C_OUT,), jnp.float32, -bound, bound)
    wg = jax.random.uniform(kwg, (C_OUT, C_IN, KH, KW), jnp.float32, -bound, bound)
    bg = jax.random.uniform(kbg, (C_OUT,), jnp.float32, -bound, bound)

    ref = jax.block_until_ready(
        gated_conv2d_ref(x, wh, bh, wg, bg, stride=1, padding=1, dilation=1))

    # f32 path: exact parity with the PyTorch module numerics.
    out = jax.block_until_ready(
        gated_conv2d(x, wh, bh, wg, bg, stride=1, padding=1, dilation=1))
    assert out.shape == (N, C_OUT, H, W), out.shape
    assert jnp.allclose(out, ref, atol=1e-5, rtol=1e-5), float(
        jnp.max(jnp.abs(out - ref)))

    # bf16-streamed path (recommended on v6e/v7x): bf16 x stream, f32 weights,
    # f32 MXU accumulate + f32 epilogue, EUP approx reciprocal in the gate.
    out_bf16 = jax.block_until_ready(
        gated_conv2d(x, wh, bh, wg, bg, stride=1, padding=1, dilation=1,
                     compute_dtype=jnp.bfloat16, approx_sigmoid=True))
    assert jnp.allclose(out_bf16, ref, atol=5e-2, rtol=5e-2), float(
        jnp.max(jnp.abs(out_bf16 - ref)))

    print("KERNEL_OK")
</pallas_src>

<mosaic_0001>
module attributes {stable_mosaic.version = 11 : i64} {
  func.func @_gated_conv_kernel(%arg0: i32, %arg1: memref<4x512xf32, #tpu.memory_space<vmem>>, %arg2: memref<9x16x4xf32, #tpu.memory_space<vmem>>, %arg3: memref<16x1xf32, #tpu.memory_space<vmem>>, %arg4: memref<8x512xf32, #tpu.memory_space<vmem>>) attributes {dimension_semantics = [#tpu.dimension_semantics<parallel>], iteration_bounds = array<i64: 1>, scalar_prefetch = 0 : i64, scratch_operands = 0 : i64, tpu.core_type = #tpu.core_type<tc>, window_params = [{transform_indices = @transform_0, window_bounds = array<i64: 4, 512>}, {pipeline_mode = #tpu.pipeline_mode<synchronous>, transform_indices = @transform_1, window_bounds = array<i64: 9, 16, 4>}, {pipeline_mode = #tpu.pipeline_mode<synchronous>, transform_indices = @transform_2, window_bounds = array<i64: 16, 1>}, {transform_indices = @transform_3, window_bounds = array<i64: 8, 512>}]} {
    %c0 = arith.constant 0 : index
    %c0_0 = arith.constant 0 : index
    %0 = vector.load %arg1[%c0, %c0_0] : memref<4x512xf32, #tpu.memory_space<vmem>>, vector<4x512xf32>
    %1 = tpu.iota {dimensions = array<i32: 1>} : vector<1x512xi32>
    %c255_i32 = arith.constant 255 : i32
    %2 = vector.broadcast %c255_i32 : i32 to vector<1x512xi32>
    %3 = arith.andi %1, %2 : vector<1x512xi32>
    %c4_i32 = arith.constant 4 : i32
    %4 = vector.broadcast %c4_i32 : i32 to vector<1x512xi32>
    %5 = arith.shrsi %3, %4 : vector<1x512xi32>
    %c16_i32 = arith.constant 16 : i32
    %6 = vector.broadcast %c16_i32 : i32 to vector<1x512xi32>
    %7 = arith.muli %5, %6 : vector<1x512xi32>
    %8 = arith.subi %3, %7 : vector<1x512xi32>
    %c0_1 = arith.constant 0 : index
    %c0_2 = arith.constant 0 : index
    %9 = vector.load %arg3[%c0_1, %c0_2] : memref<16x1xf32, #tpu.memory_space<vmem>>, vector<16x1xf32>
    %10 = vector.shape_cast %9 : vector<16x1xf32> to vector<16x1xf32>
    %11 = vector.broadcast %10 : vector<16x1xf32> to vector<16x512xf32>
    %c17_i32 = arith.constant 17 : i32
    %12 = tpu.dynamic_rotate %0 by %c17_i32 dim 1 : vector<4x512xf32>, i32 -> vector<4x512xf32>
    %c1_i32 = arith.constant 1 : i32
    %13 = vector.broadcast %c1_i32 : i32 to vector<1x512xi32>
    %14 = arith.cmpi sge, %5, %13 : vector<1x512xi32>
    %c17_i32_3 = arith.constant 17 : i32
    %15 = vector.broadcast %c17_i32_3 : i32 to vector<1x512xi32>
    %16 = arith.cmpi slt, %5, %15 : vector<1x512xi32>
    %17 = arith.andi %14, %16 : vector<1x512xi1>
    %c1_i32_4 = arith.constant 1 : i32
    %18 = vector.broadcast %c1_i32_4 : i32 to vector<1x512xi32>
    %19 = arith.cmpi sge, %8, %18 : vector<1x512xi32>
    %20 = arith.andi %17, %19 : vector<1x512xi1>
    %c17_i32_5 = arith.constant 17 : i32
    %21 = vector.broadcast %c17_i32_5 : i32 to vector<1x512xi32>
    %22 = arith.cmpi slt, %8, %21 : vector<1x512xi32>
    %23 = arith.andi %20, %22 : vector<1x512xi1>
    %cst = arith.constant 0.000000e+00 : f32
    %24 = vector.shape_cast %23 : vector<1x512xi1> to vector<1x512xi1>
    %25 = vector.broadcast %24 : vector<1x512xi1> to vector<4x512xi1>
    %26 = vector.broadcast %cst : f32 to vector<4x512xf32>
    %27 = arith.select %25, %12, %26 : vector<4x512xi1>, vector<4x512xf32>
    %c0_6 = arith.constant 0 : index
    %c0_7 = arith.constant 0 : index
    %c0_8 = arith.constant 0 : index
    %28 = vector.load %arg2[%c0_6, %c0_7, %c0_8] : memref<9x16x4xf32, #tpu.memory_space<vmem>>, vector<1x16x4xf32>
    %29 = vector.shape_cast %28 : vector<1x16x4xf32> to vector<16x4xf32>
    %cst_9 = arith.constant dense<0.000000e+00> : vector<16x512xf32>
    %30 = tpu.matmul %29, %27, %cst_9 {dimension_numbers = #tpu.dot_dimension_numbers<[1], [0], [0], [1], [0, 0, 1, 1], [], []>} : vector<16x4xf32>, vector<4x512xf32>, vector<16x512xf32> -> vector<16x512xf32>
    %31 = arith.addf %11, %30 : vector<16x512xf32>
    %c16_i32_10 = arith.constant 16 : i32
    %32 = tpu.dynamic_rotate %0 by %c16_i32_10 dim 1 : vector<4x512xf32>, i32 -> vector<4x512xf32>
    %c1_i32_11 = arith.constant 1 : i32
    %33 = vector.broadcast %c1_i32_11 : i32 to vector<1x512xi32>
    %34 = arith.cmpi sge, %5, %33 : vector<1x512xi32>
    %c17_i32_12 = arith.constant 17 : i32
    %35 = vector.broadcast %c17_i32_12 : i32 to vector<1x512xi32>
    %36 = arith.cmpi slt, %5, %35 : vector<1x512xi32>
    %37 = arith.andi %34, %36 : vector<1x512xi1>
    %c0_i32 = arith.constant 0 : i32
    %38 = vector.broadcast %c0_i32 : i32 to vector<1x512xi32>
    %39 = arith.cmpi sge, %8, %38 : vector<1x512xi32>
    %40 = arith.andi %37, %39 : vector<1x512xi1>
    %c16_i32_13 = arith.constant 16 : i32
    %41 = vector.broadcast %c16_i32_13 : i32 to vector<1x512xi32>
    %42 = arith.cmpi slt, %8, %41 : vector<1x512xi32>
    %43 = arith.andi %40, %42 : vector<1x512xi1>
    %cst_14 = arith.constant 0.000000e+00 : f32
    %44 = vector.shape_cast %43 : vector<1x512xi1> to vector<1x512xi1>
    %45 = vector.broadcast %44 : vector<1x512xi1> to vector<4x512xi1>
    %46 = vector.broadcast %cst_14 : f32 to vector<4x512xf32>
    %47 = arith.select %45, %32, %46 : vector<4x512xi1>, vector<4x512xf32>
    %c1 = arith.constant 1 : index
    %c0_15 = arith.constant 0 : index
    %c0_16 = arith.constant 0 : index
    %48 = vector.load %arg2[%c1, %c0_15, %c0_16] : memref<9x16x4xf32, #tpu.memory_space<vmem>>, vector<1x16x4xf32>
    %49 = vector.shape_cast %48 : vector<1x16x4xf32> to vector<16x4xf32>
    %cst_17 = arith.constant dense<0.000000e+00> : vector<16x512xf32>
    %50 = tpu.matmul %49, %47, %cst_17 {dimension_numbers = #tpu.dot_dimension_numbers<[1], [0], [0], [1], [0, 0, 1, 1], [], []>} : vector<16x4xf32>, vector<4x512xf32>, vector<16x512xf32> -> vector<16x512xf32>
    %51 = arith.addf %31, %50 : vector<16x512xf32>
    %c15_i32 = arith.constant 15 : i32
    %52 = tpu.dynamic_rotate %0 by %c15_i32 dim 1 : vector<4x512xf32>, i32 -> vector<4x512xf32>
    %c1_i32_18 = arith.constant 1 : i32
    %53 = vector.broadcast %c1_i32_18 : i32 to vector<1x512xi32>
    %54 = arith.cmpi sge, %5, %53 : vector<1x512xi32>
    %c17_i32_19 = arith.constant 17 : i32
    %55 = vector.broadcast %c17_i32_19 : i32 to vector<1x512xi32>
    %56 = arith.cmpi slt, %5, %55 : vector<1x512xi32>
    %57 = arith.andi %54, %56 : vector<1x512xi1>
    %c-1_i32 = arith.constant -1 : i32
    %58 = vector.broadcast %c-1_i32 : i32 to vector<1x512xi32>
    %59 = arith.cmpi sge, %8, %58 : vector<1x512xi32>
    %60 = arith.andi %57, %59 : vector<1x512xi1>
    %c15_i32_20 = arith.constant 15 : i32
    %61 = vector.broadcast %c15_i32_20 : i32 to vector<1x512xi32>
    %62 = arith.cmpi slt, %8, %61 : vector<1x512xi32>
    %63 = arith.andi %60, %62 : vector<1x512xi1>
    %cst_21 = arith.constant 0.000000e+00 : f32
    %64 = vector.shape_cast %63 : vector<1x512xi1> to vector<1x512xi1>
    %65 = vector.broadcast %64 : vector<1x512xi1> to vector<4x512xi1>
    %66 = vector.broadcast %cst_21 : f32 to vector<4x512xf32>
    %67 = arith.select %65, %52, %66 : vector<4x512xi1>, vector<4x512xf32>
    %c2 = arith.constant 2 : index
    %c0_22 = arith.constant 0 : index
    %c0_23 = arith.constant 0 : index
    %68 = vector.load %arg2[%c2, %c0_22, %c0_23] : memref<9x16x4xf32, #tpu.memory_space<vmem>>, vector<1x16x4xf32>
    %69 = vector.shape_cast %68 : vector<1x16x4xf32> to vector<16x4xf32>
    %cst_24 = arith.constant dense<0.000000e+00> : vector<16x512xf32>
    %70 = tpu.matmul %69, %67, %cst_24 {dimension_numbers = #tpu.dot_dimension_numbers<[1], [0], [0], [1], [0, 0, 1, 1], [], []>} : vector<16x4xf32>, vector<4x512xf32>, vector<16x512xf32> -> vector<16x512xf32>
    %71 = arith.addf %51, %70 : vector<16x512xf32>
    %c1_i32_25 = arith.constant 1 : i32
    %72 = tpu.dynamic_rotate %0 by %c1_i32_25 dim 1 : vector<4x512xf32>, i32 -> vector<4x512xf32>
    %c0_i32_26 = arith.constant 0 : i32
    %73 = vector.broadcast %c0_i32_26 : i32 to vector<1x512xi32>
    %74 = arith.cmpi sge, %5, %73 : vector<1x512xi32>
    %c16_i32_27 = arith.constant 16 : i32
    %75 = vector.broadcast %c16_i32_27 : i32 to vector<1x512xi32>
    %76 = arith.cmpi slt, %5, %75 : vector<1x512xi32>
    %77 = arith.andi %74, %76 : vector<1x512xi1>
    %c1_i32_28 = arith.constant 1 : i32
    %78 = vector.broadcast %c1_i32_28 : i32 to vector<1x512xi32>
    %79 = arith.cmpi sge, %8, %78 : vector<1x512xi32>
    %80 = arith.andi %77, %79 : vector<1x512xi1>
    %c17_i32_29 = arith.constant 17 : i32
    %81 = vector.broadcast %c17_i32_29 : i32 to vector<1x512xi32>
    %82 = arith.cmpi slt, %8, %81 : vector<1x512xi32>
    %83 = arith.andi %80, %82 : vector<1x512xi1>
    %cst_30 = arith.constant 0.000000e+00 : f32
    %84 = vector.shape_cast %83 : vector<1x512xi1> to vector<1x512xi1>
    %85 = vector.broadcast %84 : vector<1x512xi1> to vector<4x512xi1>
    %86 = vector.broadcast %cst_30 : f32 to vector<4x512xf32>
    %87 = arith.select %85, %72, %86 : vector<4x512xi1>, vector<4x512xf32>
    %c3 = arith.constant 3 : index
    %c0_31 = arith.constant 0 : index
    %c0_32 = arith.constant 0 : index
    %88 = vector.load %arg2[%c3, %c0_31, %c0_32] : memref<9x16x4xf32, #tpu.memory_space<vmem>>, vector<1x16x4xf32>
    %89 = vector.shape_cast %88 : vector<1x16x4xf32> to vector<16x4xf32>
    %cst_33 = arith.constant dense<0.000000e+00> : vector<16x512xf32>
    %90 = tpu.matmul %89, %87, %cst_33 {dimension_numbers = #tpu.dot_dimension_numbers<[1], [0], [0], [1], [0, 0, 1, 1], [], []>} : vector<16x4xf32>, vector<4x512xf32>, vector<16x512xf32> -> vector<16x512xf32>
    %91 = arith.addf %71, %90 : vector<16x512xf32>
    %c0_i32_34 = arith.constant 0 : i32
    %92 = vector.broadcast %c0_i32_34 : i32 to vector<1x512xi32>
    %93 = arith.cmpi sge, %5, %92 : vector<1x512xi32>
    %c16_i32_35 = arith.constant 16 : i32
    %94 = vector.broadcast %c16_i32_35 : i32 to vector<1x512xi32>
    %95 = arith.cmpi slt, %5, %94 : vector<1x512xi32>
    %96 = arith.andi %93, %95 : vector<1x512xi1>
    %c0_i32_36 = arith.constant 0 : i32
    %97 = vector.broadcast %c0_i32_36 : i32 to vector<1x512xi32>
    %98 = arith.cmpi sge, %8, %97 : vector<1x512xi32>
    %99 = arith.andi %96, %98 : vector<1x512xi1>
    %c16_i32_37 = arith.constant 16 : i32
    %100 = vector.broadcast %c16_i32_37 : i32 to vector<1x512xi32>
    %101 = arith.cmpi slt, %8, %100 : vector<1x512xi32>
    %102 = arith.andi %99, %101 : vector<1x512xi1>
    %cst_38 = arith.constant 0.000000e+00 : f32
    %103 = vector.shape_cast %102 : vector<1x512xi1> to vector<1x512xi1>
    %104 = vector.broadcast %103 : vector<1x512xi1> to vector<4x512xi1>
    %105 = vector.broadcast %cst_38 : f32 to vector<4x512xf32>
    %106 = arith.select %104, %0, %105 : vector<4x512xi1>, vector<4x512xf32>
    %c4 = arith.constant 4 : index
    %c0_39 = arith.constant 0 : index
    %c0_40 = arith.constant 0 : index
    %107 = vector.load %arg2[%c4, %c0_39, %c0_40] : memref<9x16x4xf32, #tpu.memory_space<vmem>>, vector<1x16x4xf32>
    %108 = vector.shape_cast %107 : vector<1x16x4xf32> to vector<16x4xf32>
    %cst_41 = arith.constant dense<0.000000e+00> : vector<16x512xf32>
    %109 = tpu.matmul %108, %106, %cst_41 {dimension_numbers = #tpu.dot_dimension_numbers<[1], [0], [0], [1], [0, 0, 1, 1], [], []>} : vector<16x4xf32>, vector<4x512xf32>, vector<16x512xf32> -> vector<16x512xf32>
    %110 = arith.addf %91, %109 : vector<16x512xf32>
    %c511_i32 = arith.constant 511 : i32
    %111 = tpu.dynamic_rotate %0 by %c511_i32 dim 1 : vector<4x512xf32>, i32 -> vector<4x512xf32>
    %c0_i32_42 = arith.constant 0 : i32
    %112 = vector.broadcast %c0_i32_42 : i32 to vector<1x512xi32>
    %113 = arith.cmpi sge, %5, %112 : vector<1x512xi32>
    %c16_i32_43 = arith.constant 16 : i32
    %114 = vector.broadcast %c16_i32_43 : i32 to vector<1x512xi32>
    %115 = arith.cmpi slt, %5, %114 : vector<1x512xi32>
    %116 = arith.andi %113, %115 : vector<1x512xi1>
    %c-1_i32_44 = arith.constant -1 : i32
    %117 = vector.broadcast %c-1_i32_44 : i32 to vector<1x512xi32>
    %118 = arith.cmpi sge, %8, %117 : vector<1x512xi32>
    %119 = arith.andi %116, %118 : vector<1x512xi1>
    %c15_i32_45 = arith.constant 15 : i32
    %120 = vector.broadcast %c15_i32_45 : i32 to vector<1x512xi32>
    %121 = arith.cmpi slt, %8, %120 : vector<1x512xi32>
    %122 = arith.andi %119, %121 : vector<1x512xi1>
    %cst_46 = arith.constant 0.000000e+00 : f32
    %123 = vector.shape_cast %122 : vector<1x512xi1> to vector<1x512xi1>
    %124 = vector.broadcast %123 : vector<1x512xi1> to vector<4x512xi1>
    %125 = vector.broadcast %cst_46 : f32 to vector<4x512xf32>
    %126 = arith.select %124, %111, %125 : vector<4x512xi1>, vector<4x512xf32>
    %c5 = arith.constant 5 : index
    %c0_47 = arith.constant 0 : index
    %c0_48 = arith.constant 0 : index
    %127 = vector.load %arg2[%c5, %c0_47, %c0_48] : memref<9x16x4xf32, #tpu.memory_space<vmem>>, vector<1x16x4xf32>
    %128 = vector.shape_cast %127 : vector<1x16x4xf32> to vector<16x4xf32>
    %cst_49 = arith.constant dense<0.000000e+00> : vector<16x512xf32>
    %129 = tpu.matmul %128, %126, %cst_49 {dimension_numbers = #tpu.dot_dimension_numbers<[1], [0], [0], [1], [0, 0, 1, 1], [], []>} : vector<16x4xf32>, vector<4x512xf32>, vector<16x512xf32> -> vector<16x512xf32>
    %130 = arith.addf %110, %129 : vector<16x512xf32>
    %c497_i32 = arith.constant 497 : i32
    %131 = tpu.dynamic_rotate %0 by %c497_i32 dim 1 : vector<4x512xf32>, i32 -> vector<4x512xf32>
    %c-1_i32_50 = arith.constant -1 : i32
    %132 = vector.broadcast %c-1_i32_50 : i32 to vector<1x512xi32>
    %133 = arith.cmpi sge, %5, %132 : vector<1x512xi32>
    %c15_i32_51 = arith.constant 15 : i32
    %134 = vector.broadcast %c15_i32_51 : i32 to vector<1x512xi32>
    %135 = arith.cmpi slt, %5, %134 : vector<1x512xi32>
    %136 = arith.andi %133, %135 : vector<1x512xi1>
    %c1_i32_52 = arith.constant 1 : i32
    %137 = vector.broadcast %c1_i32_52 : i32 to vector<1x512xi32>
    %138 = arith.cmpi sge, %8, %137 : vector<1x512xi32>
    %139 = arith.andi %136, %138 : vector<1x512xi1>
    %c17_i32_53 = arith.constant 17 : i32
    %140 = vector.broadcast %c17_i32_53 : i32 to vector<1x512xi32>
    %141 = arith.cmpi slt, %8, %140 : vector<1x512xi32>
    %142 = arith.andi %139, %141 : vector<1x512xi1>
    %cst_54 = arith.constant 0.000000e+00 : f32
    %143 = vector.shape_cast %142 : vector<1x512xi1> to vector<1x512xi1>
    %144 = vector.broadcast %143 : vector<1x512xi1> to vector<4x512xi1>
    %145 = vector.broadcast %cst_54 : f32 to vector<4x512xf32>
    %146 = arith.select %144, %131, %145 : vector<4x512xi1>, vector<4x512xf32>
    %c6 = arith.constant 6 : index
    %c0_55 = arith.constant 0 : index
    %c0_56 = arith.constant 0 : index
    %147 = vector.load %arg2[%c6, %c0_55, %c0_56] : memref<9x16x4xf32, #tpu.memory_space<vmem>>, vector<1x16x4xf32>
    %148 = vector.shape_cast %147 : vector<1x16x4xf32> to vector<16x4xf32>
    %cst_57 = arith.constant dense<0.000000e+00> : vector<16x512xf32>
    %149 = tpu.matmul %148, %146, %cst_57 {dimension_numbers = #tpu.dot_dimension_numbers<[1], [0], [0], [1], [0, 0, 1, 1], [], []>} : vector<16x4xf32>, vector<4x512xf32>, vector<16x512xf32> -> vector<16x512xf32>
    %150 = arith.addf %130, %149 : vector<16x512xf32>
    %c496_i32 = arith.constant 496 : i32
    %151 = tpu.dynamic_rotate %0 by %c496_i32 dim 1 : vector<4x512xf32>, i32 -> vector<4x512xf32>
    %c-1_i32_58 = arith.constant -1 : i32
    %152 = vector.broadcast %c-1_i32_58 : i32 to vector<1x512xi32>
    %153 = arith.cmpi sge, %5, %152 : vector<1x512xi32>
    %c15_i32_59 = arith.constant 15 : i32
    %154 = vector.broadcast %c15_i32_59 : i32 to vector<1x512xi32>
    %155 = arith.cmpi slt, %5, %154 : vector<1x512xi32>
    %156 = arith.andi %153, %155 : vector<1x512xi1>
    %c0_i32_60 = arith.constant 0 : i32
    %157 = vector.broadcast %c0_i32_60 : i32 to vector<1x512xi32>
    %158 = arith.cmpi sge, %8, %157 : vector<1x512xi32>
    %159 = arith.andi %156, %158 : vector<1x512xi1>
    %c16_i32_61 = arith.constant 16 : i32
    %160 = vector.broadcast %c16_i32_61 : i32 to vector<1x512xi32>
    %161 = arith.cmpi slt, %8, %160 : vector<1x512xi32>
    %162 = arith.andi %159, %161 : vector<1x512xi1>
    %cst_62 = arith.constant 0.000000e+00 : f32
    %163 = vector.shape_cast %162 : vector<1x512xi1> to vector<1x512xi1>
    %164 = vector.broadcast %163 : vector<1x512xi1> to vector<4x512xi1>
    %165 = vector.broadcast %cst_62 : f32 to vector<4x512xf32>
    %166 = arith.select %164, %151, %165 : vector<4x512xi1>, vector<4x512xf32>
    %c7 = arith.constant 7 : index
    %c0_63 = arith.constant 0 : index
    %c0_64 = arith.constant 0 : index
    %167 = vector.load %arg2[%c7, %c0_63, %c0_64] : memref<9x16x4xf32, #tpu.memory_space<vmem>>, vector<1x16x4xf32>
    %168 = vector.shape_cast %167 : vector<1x16x4xf32> to vector<16x4xf32>
    %cst_65 = arith.constant dense<0.000000e+00> : vector<16x512xf32>
    %169 = tpu.matmul %168, %166, %cst_65 {dimension_numbers = #tpu.dot_dimension_numbers<[1], [0], [0], [1], [0, 0, 1, 1], [], []>} : vector<16x4xf32>, vector<4x512xf32>, vector<16x512xf32> -> vector<16x512xf32>
    %170 = arith.addf %150, %169 : vector<16x512xf32>
    %c495_i32 = arith.constant 495 : i32
    %171 = tpu.dynamic_rotate %0 by %c495_i32 dim 1 : vector<4x512xf32>, i32 -> vector<4x512xf32>
    %c-1_i32_66 = arith.constant -1 : i32
    %172 = vector.broadcast %c-1_i32_66 : i32 to vector<1x512xi32>
    %173 = arith.cmpi sge, %5, %172 : vector<1x512xi32>
    %c15_i32_67 = arith.constant 15 : i32
    %174 = vector.broadcast %c15_i32_67 : i32 to vector<1x512xi32>
    %175 = arith.cmpi slt, %5, %174 : vector<1x512xi32>
    %176 = arith.andi %173, %175 : vector<1x512xi1>
    %c-1_i32_68 = arith.constant -1 : i32
    %177 = vector.broadcast %c-1_i32_68 : i32 to vector<1x512xi32>
    %178 = arith.cmpi sge, %8, %177 : vector<1x512xi32>
    %179 = arith.andi %176, %178 : vector<1x512xi1>
    %c15_i32_69 = arith.constant 15 : i32
    %180 = vector.broadcast %c15_i32_69 : i32 to vector<1x512xi32>
    %181 = arith.cmpi slt, %8, %180 : vector<1x512xi32>
    %182 = arith.andi %179, %181 : vector<1x512xi1>
    %cst_70 = arith.constant 0.000000e+00 : f32
    %183 = vector.shape_cast %182 : vector<1x512xi1> to vector<1x512xi1>
    %184 = vector.broadcast %183 : vector<1x512xi1> to vector<4x512xi1>
    %185 = vector.broadcast %cst_70 : f32 to vector<4x512xf32>
    %186 = arith.select %184, %171, %185 : vector<4x512xi1>, vector<4x512xf32>
    %c8 = arith.constant 8 : index
    %c0_71 = arith.constant 0 : index
    %c0_72 = arith.constant 0 : index
    %187 = vector.load %arg2[%c8, %c0_71, %c0_72] : memref<9x16x4xf32, #tpu.memory_space<vmem>>, vector<1x16x4xf32>
    %188 = vector.shape_cast %187 : vector<1x16x4xf32> to vector<16x4xf32>
    %cst_73 = arith.constant dense<0.000000e+00> : vector<16x512xf32>
    %189 = tpu.matmul %188, %186, %cst_73 {dimension_numbers = #tpu.dot_dimension_numbers<[1], [0], [0], [1], [0, 0, 1, 1], [], []>} : vector<16x4xf32>, vector<4x512xf32>, vector<16x512xf32> -> vector<16x512xf32>
    %190 = arith.addf %170, %189 : vector<16x512xf32>
    %191 = vector.extract_strided_slice %190 {offsets = [0, 0], sizes = [8, 512], strides = [1, 1]} : vector<16x512xf32> to vector<8x512xf32>
    %192 = vector.extract_strided_slice %190 {offsets = [8, 0], sizes = [8, 512], strides = [1, 1]} : vector<16x512xf32> to vector<8x512xf32>
    %cst_74 = arith.constant 0.000000e+00 : f32
    %193 = vector.broadcast %cst_74 : f32 to vector<8x512xf32>
    %194 = arith.subf %193, %192 : vector<8x512xf32>
    %195 = math.exp %194 : vector<8x512xf32>
    %cst_75 = arith.constant 1.000000e+00 : f32
    %196 = vector.broadcast %cst_75 : f32 to vector<8x512xf32>
    %197 = arith.addf %196, %195 : vector<8x512xf32>
    %198 = tpu.reciprocal %197 : vector<8x512xf32> -> vector<8x512xf32>
    %199 = arith.mulf %191, %198 : vector<8x512xf32>
    %c0_76 = arith.constant 0 : index
    %c0_77 = arith.constant 0 : index
    %200 = vector.load %arg4[%c0_76, %c0_77] : memref<8x512xf32, #tpu.memory_space<vmem>>, vector<8x512xf32>
    tpu.vector_store %arg4[%c0_76, %c0_77], %199 {strides = array<i32>} : memref<8x512xf32, #tpu.memory_space<vmem>>, vector<8x512xf32>,
    return
  }
  func.func @transform_0(%arg0: i32) -> (i32, i32) {
    %c0_i32 = arith.constant 0 : i32
    %c0_i32_0 = arith.constant 0 : i32
    return %c0_i32, %arg0 : i32, i32
  }
  func.func @transform_1(%arg0: i32) -> (i32, i32, i32) {
    %c0_i32 = arith.constant 0 : i32
    %c0_i32_0 = arith.constant 0 : i32
    %c0_i32_1 = arith.constant 0 : i32
    %c0_i32_2 = arith.constant 0 : i32
    return %c0_i32, %c0_i32_0, %c0_i32_1 : i32, i32, i32
  }
  func.func @transform_2(%arg0: i32) -> (i32, i32) {
    %c0_i32 = arith.constant 0 : i32
    %c0_i32_0 = arith.constant 0 : i32
    %c0_i32_1 = arith.constant 0 : i32
    return %c0_i32, %c0_i32_0 : i32, i32
  }
  func.func @transform_3(%arg0: i32) -> (i32, i32) {
    %c0_i32 = arith.constant 0 : i32
    %c0_i32_0 = arith.constant 0 : i32
    return %c0_i32, %arg0 : i32, i32
  }
}

</mosaic_0001>

<bundles_post_ra>
// kernel: gated_conv2d.1
= control target key start
LH: loop header
LB: loop body
LE: loop exit
PB: predicated region body
PF: predicated region fallthrough
CT: control target
= control target key end

     0   :  { %v2269_v2 = vmov 0.0   ;;  %s2270_s16 = smov 17   ;;  %s2272_s17 = smov 15   ;;  %v2278_v5 = vmov 0   ;;  %v16_v8 = vlaneseq  ;;  %v3319_v28 = vmov 0  ;;  %s3293_s0 = inlined_call_operand.vmem [shape: f32[4,512], index: 0, kind: input, shape index: {}]   ;;  %s3294_s2 = inlined_call_operand.vmem [shape: f32[16,1], index: 2, kind: input, shape index: {}]   ;;  %s3295_s1 = inlined_call_operand.vmem [shape: f32[9,16,4], index: 1, kind: input, shape index: {}]   ;;  %s3296_s3 = inlined_call_operand.vmem [shape: f32[8,512], index: 3, kind: output, shape index: {}]  }
   0x1   :  { %v2302_v0 = vld [vmem:[%s3293_s0 + $0x8] sm:$0xff]  ;;  %v2307_v1 = vld [vmem:[%s3293_s0] sm:$0xff]  ;;  %194 = vmatprep.mubr.f32.mxu0 %v2269_v2  ;;  %271 = vmatprep.mubr.f32.mxu1 %v2269_v2  ;;  %s2271_s0 = smov 16   ;;  %s2273_s18 = smov 1   ;;  %v3323_v31 = vmov 0  ;;  %v3329_v34 = vmov 0 }
   0x2   :  { %59 = vrot.lane.b32.xlu1 %v2302_v0, %s2270_s16  ;;  %55 = vrot.lane.b32.xlu0 %v2307_v1, %s2270_s16  ;;  %v2315_v3 = vcombine.high %v2302_v0, %v2302_v0  ;;  %v2319_v4 = vcombine.high %v2307_v1, %v2307_v1  ;;  %s2274_s19 = smov 127   ;;  %s2275_s20 = smov 113   ;;  %v37_v6 = vld [vmem:[%s3294_s2] sm:$0xff]  ;;  %v38_v7 = vld [vmem:[%s3294_s2 + $0x8] sm:$0xff]  ;;  %v2357_v9 = vand.u32 127, %v16_v8  ;;  %v3331_v35 = vmov 0 }
   0x3   :  { %s2276_s21 = smov 112   ;;  %s2277_s22 = smov 111   ;;  %2250 = vset.pattern.permute.xlu1 %v2278_v5  ;;  %2249 = vset.pattern.permute.xlu0 %v2278_v5  ;;  %v3333_v36 = vmov 0  ;;  %v3347_v43 = vmov 0  ;;  %v108_v56 = vld [vmem:[%s3295_s1] sm:$0xff]  ;;  %v3369_v58 = vmov 0 }
   0x4   :  { %v18_v10 = vadd.s32 128, %v2357_v9  ;;  %v20_v11 = vadd.s32 384, %v2357_v9  ;;  %v19_v12 = vadd.s32 256, %v2357_v9  ;;  %v21_v15 = vand.u32 255, %v2357_v9  ;;  %v2148_v41 = vld [vmem:[%s3295_s1 + $0x78] sm:$0xff] }
   0x5   :  { %v3371_v59 = vmov 0  ;;  %v3430_v42 = vmov 0 }
   0x6   :  { %61 = vrot.lane.b32.xlu1 %v2315_v3, %s2270_s16  ;;  %57 = vrot.lane.b32.xlu0 %v2319_v4, %s2270_s16  ;;  %v22_v13 = vand.u32 255, %v18_v10  ;;  %v24_v14 = vand.u32 255, %v20_v11  ;;  %v23_v16 = vand.u32 255, %v19_v12  ;;  %v2367_v19 = vshra.s32 %v21_v15, 4  ;;  %v2128_v10 = vld [vmem:[%s3295_s1 + $0x58] sm:$0xff] }
   0x7   :  { %v3390_v11 = vmov 0 }
   0x8   :  { %v2363_v17 = vshra.s32 %v22_v13, 4  ;;  %v2365_v18 = vshra.s32 %v24_v14, 4  ;;  %v2369_v20 = vshra.s32 %v23_v16, 4  ;;  %v29_v23 = vmul.u32 16, %v2367_v19 }
   0x9   :  { %vm68_vm0 = vcmp.ge.s32.totalorder %v2367_v19, 1  ;;  %vm72_vm1 = vcmp.lt.s32.totalorder %v2367_v19, 17 }
   0xa   :  { %294 = vrot.lane.b32.xlu1 %v2319_v4, %s2271_s0  ;;  %292 = vrot.lane.b32.xlu0 %v2307_v1, %s2271_s0  ;;  %v30_v21 = vmul.u32 16, %v2363_v17  ;;  %v32_v22 = vmul.u32 16, %v2365_v18  ;;  %vm69_vm2 = vcmp.ge.s32.totalorder %v2363_v17, 1  ;;  %vm73_vm3 = vcmp.lt.s32.totalorder %v2363_v17, 17  ;;  %vm2387_vm6 = vmand %vm68_vm0, %vm72_vm1 }
   0xb   :  { %v31_v24 = vmul.u32 16, %v2369_v20  ;;  %vm71_vm4 = vcmp.ge.s32.totalorder %v2365_v18, 1  ;;  %vm75_vm5 = vcmp.lt.s32.totalorder %v2365_v18, 17  ;;  %v2385_v27 = vsub.s32 %v21_v15, %v29_v23  ;;  %vm2395_vm9 = vmand %vm69_vm2, %vm73_vm3 }
   0xc   :  { %v2375_v25 = vsub.s32 %v22_v13, %v30_v21  ;;  %v2381_v26 = vsub.s32 %v24_v14, %v32_v22  ;;  %v3320_v28 = vsel %vm2387_vm6, 4294967295, %v3319_v28  ;;  %vm70_vm7 = vcmp.ge.s32.totalorder %v2369_v20, 1  ;;  %vm2400_vm11 = vmand %vm71_vm4, %vm75_vm5 }
   0xd   :  { %v2391_v29 = vsub.s32 %v23_v16, %v31_v24  ;;  %vm74_vm8 = vcmp.lt.s32.totalorder %v2369_v20, 17  ;;  %v3324_v31 = vsel %vm2400_vm11, 4294967295, %v3323_v31  ;;  %vm3299_vm13 = vcmp.ge.s32.totalorder %v2385_v27, 1 }
   0xe   :  { %298 = vrot.lane.b32.xlu1 %v2315_v3, %s2271_s0  ;;  %296 = vrot.lane.b32.xlu0 %v2302_v0, %s2271_s0  ;;  %vm3297_vm10 = vcmp.ge.s32.totalorder %v2375_v25, 1  ;;  %vm3298_vm12 = vcmp.ge.s32.totalorder %v2381_v26, 1  ;;  %vm2406_vm14 = vmand %vm70_vm7, %vm74_vm8  ;;  %vm3307_vm1 = vcmp.lt.s32.totalorder %v2375_v25, 17  ;;  %vm3303_vm3 = vcmp.lt.s32.totalorder %v2381_v26, 17 }
   0xf   :  { %vm85_vm15 = vmand %vm2395_vm9, %vm3297_vm10  ;;  %vm3302_vm0 = vcmp.ge.s32.totalorder %v2391_v29, 1  ;;  %vm3304_vm5 = vcmp.lt.s32.totalorder %v2385_v27, 17  ;;  %vm3305_vm8 = vcmp.lt.s32.totalorder %v2391_v29, 17  ;;  %v3404_v23 = vmov 0 }
  0x10   :  { %vm87_vm2 = vmand %vm2400_vm11, %vm3298_vm12 }
  0x11   :  { %vm84_vm4 = vmand %vm2387_vm6, %vm3299_vm13  ;;  %vm3306_vm13 = vcmp.ge.s32.totalorder %v2375_v25, 0 }
  0x12   :  { %518 = vrot.lane.b32.xlu1 %v2319_v4, %s2272_s17  ;;  %516 = vrot.lane.b32.xlu0 %v2307_v1, %s2272_s17  ;;  %vm86_vm7 = vmand %vm2406_vm14, %vm3302_vm0  ;;  %vm3308_vm0 = vcmp.ge.s32.totalorder %v2385_v27, 0 }
  0x13   :  { %vm2433_vm10 = vmand %vm85_vm15, %vm3307_vm1  ;;  %vm3343_vm1 = vcmp.lt.s32.totalorder %v2385_v27, 16 }
  0x14   :  { %vm2439_vm12 = vmand %vm87_vm2, %vm3303_vm3  ;;  %vm3310_vm2 = vcmp.ge.s32.totalorder %v2391_v29, 0 }
  0x15   :  { %v3330_v34 = vsel %vm2439_vm12, 4294967295, %v3329_v34  ;;  %vm2446_vm11 = vmand %vm84_vm4, %vm3304_vm5  ;;  %vm3311_vm4 = vcmp.lt.s32.totalorder %v2375_v25, 16 }
  0x16   :  { %522 = vrot.lane.b32.xlu1 %v2315_v3, %s2272_s17  ;;  %520 = vrot.lane.b32.xlu0 %v2302_v0, %s2272_s17  ;;  %v3332_v35 = vsel %vm2446_vm11, 4294967295, %v3331_v35  ;;  %vm2453_vm15 = vmand %vm86_vm7, %vm3305_vm8  ;;  %vm3339_vm8 = vcmp.ge.s32.totalorder %v2381_v26, 0  ;;  %vm3340_vm11 = vnez %v3324_v31  ;;  %v2087_v31 = vld [vmem:[%s3295_s1 + $0x10] sm:$0xff] }
  0x17   :  { %v3334_v36 = vsel %vm2453_vm15, 4294967295, %v3333_v36  ;;  %vm310_vm3 = vmand %vm2395_vm9, %vm3306_vm13 }
  0x18   :  { %vm2467_vm5 = vmand %vm2387_vm6, %vm3308_vm0  ;;  %vm3346_vm6 = vcmp.lt.s32.totalorder %v2391_v29, 16 }
  0x19   :  { %vm311_vm13 = vmand %vm2406_vm14, %vm3310_vm2 }
  0x1a   :  { %742 = vrot.lane.b32.xlu1 %v2319_v4, %s2273_s18  ;;  %740 = vrot.lane.b32.xlu0 %v2307_v1, %s2273_s18  ;;  %vm2480_vm15 = vmand %vm310_vm3, %vm3311_vm4  ;;  %vm3349_vm4 = vcmp.ge.s32.totalorder %v2375_v25, 4294967295  ;;  %vm758_vm3 = vcmp.lt.s32.totalorder %v2363_v17, 16 }
  0x1b   :  { %vm2490_vm12 = vmand %vm3340_vm11, %vm3339_vm8  ;;  %vm3352_vm8 = vcmp.lt.s32.totalorder %v2357_v9, 17 }
  0x1c   :  { %vm2500_vm0 = vmand %vm2467_vm5, %vm3343_vm1  ;;  %vm3312_vm5 = vcmp.ge.s32.totalorder %v2391_v29, 4294967295 }
  0x1d   :  { %vm2506_vm7 = vmand %vm311_vm13, %vm3346_vm6  ;;  %vm754_vm13 = vcmp.ge.s32.totalorder %v2363_v17, 0 }
  0x1e   :  { %746 = vrot.lane.b32.xlu1 %v2315_v3, %s2273_s18  ;;  %744 = vrot.lane.b32.xlu0 %v2302_v0, %s2273_s18  ;;  %v3348_v43 = vsel %vm2506_vm7, 4294967295, %v3347_v43  ;;  %vm2516_vm1 = vmand %vm2395_vm9, %vm3349_vm4  ;;  %vm3356_vm4 = vcmp.lt.s32.totalorder %v2381_v26, 16 }
  0x1f   :  { %vm3353_vm2 = vmmov %vm3352_vm8 }
  0x20   :  { %vm3354_vm7 = vmmov %vm3353_vm2 }
  0x21   :  { %vm3355_vm9 = vmmov %vm3353_vm2 }
  0x22   :  { %1171 = vrot.lane.b32.xlu0 %v2307_v1, %s2274_s19  ;;  %1173 = vrot.lane.b32.xlu1 %v2319_v4, %s2274_s19  ;;  %vm2536_vm6 = vmand %vm2490_vm12, %vm3356_vm4  ;;  %vm3362_vm12 = vcmp.ge.s32.totalorder %v2385_v27, 4294967295 }
  0x26   :  { %1175 = vrot.lane.b32.xlu0 %v2302_v0, %s2274_s19  ;;  %1177 = vrot.lane.b32.xlu1 %v2315_v3, %s2274_s19 }
  0x2a   :  { %1387 = vrot.lane.b32.xlu0 %v2307_v1, %s2275_s20  ;;  %1389 = vrot.lane.b32.xlu1 %v2319_v4, %s2275_s20 }
  0x2e   :  { %1391 = vrot.lane.b32.xlu0 %v2302_v0, %s2275_s20  ;;  %1393 = vrot.lane.b32.xlu1 %v2315_v3, %s2275_s20 }
  0x32   :  { %1615 = vrot.lane.b32.xlu0 %v2307_v1, %s2276_s21  ;;  %1617 = vrot.lane.b32.xlu1 %v2319_v4, %s2276_s21 }
  0x36   :  { %1619 = vrot.lane.b32.xlu0 %v2302_v0, %s2276_s21  ;;  %1621 = vrot.lane.b32.xlu1 %v2315_v3, %s2276_s21 }
  0x3a   :  { %1831 = vrot.lane.b32.xlu0 %v2307_v1, %s2277_s22  ;;  %1833 = vrot.lane.b32.xlu1 %v2319_v4, %s2277_s22 }
  0x3e   :  { %1835 = vrot.lane.b32.xlu0 %v2302_v0, %s2277_s22  ;;  %1837 = vrot.lane.b32.xlu1 %v2315_v3, %s2277_s22 }
  0x42   :  { %41 = vperm.xlu1 %2250, %v37_v6   ;;  %46 = vperm.xlu0 %2249, %v38_v7   ;;  %v109_v7 = vld [vmem:[%s3295_s1 + $0x8] sm:$0xff] }
  0x74   :  { %v60_v38 = vpop.permute.xlu1 %59  ;;  %v56_v39 = vpop.permute.xlu0 %55 }
  0x78   :  { %v62_v44 = vpop.permute.xlu1 %61  ;;  %v58_v45 = vpop.permute.xlu0 %57 }
  0x79   :  { %v67_v47 = vsel %vm3352_vm8, %v62_v44, %v56_v39  ;;  %v65_v48 = vsel %vm3353_vm2, %v58_v45, %v60_v38  ;;  %v66_v49 = vsel %vm3354_vm7, %v56_v39, %v58_v45  ;;  %v64_v50 = vsel %vm3355_vm9, %v60_v38, %v62_v44  ;;  %v2088_v39 = vld [vmem:[%s3295_s1 + $0x18] sm:$0xff] }
  0x7a   :  { %v105_v52 = vsel %vm2433_vm10, %v66_v49, 0.0  ;;  %vm3359_vm8 = vnez %v3330_v34  ;;  %vm3360_vm2 = vnez %v3332_v35  ;;  %vm3361_vm7 = vnez %v3334_v36 }
  0x7b   :  { %v107_v53 = vsel %vm3359_vm8, %v64_v50, 0.0  ;;  %v104_v54 = vsel %vm3360_vm2, %v67_v47, 0.0  ;;  %v106_v55 = vsel %vm3361_vm7, %v65_v48, 0.0  ;;  %vm3363_vm9 = vnez %v3320_v28 }
  0x7c   :  { %vm2555_vm4 = vmand %vm3363_vm9, %vm3362_vm12  ;;  %vm3366_vm10 = vcmask 1043456   ;;  %vm3368_vm2 = vcmp.lt.s32.totalorder %v2375_v25, 15  ;;  %v295_v60 = vpop.permute.xlu1 %294  ;;  %v293_v61 = vpop.permute.xlu0 %292 }
  0x7d   :  { %2079 = vmatprep.subr.msk.mxu0 %vm3366_vm10, %v105_v52  ;;  %vm3367_vm8 = vmmov %vm3366_vm10 }
  0x7e   :  { %2083 = vmatprep.subr.msk.mxu1 %vm3367_vm8, %v107_v53  ;;  %vm2565_vm7 = vmand %vm2516_vm1, %vm3368_vm2  ;;  %vm757_vm2 = vcmp.lt.s32.totalorder %v2367_v19, 16 }
  0x7f   :  { %v3370_v58 = vsel %vm2565_vm7, 4294967295, %v3369_v58  ;;  %vm2573_vm12 = vmand %vm754_vm13, %vm758_vm3  ;;  %vm3313_vm3 = vcmp.lt.s32.totalorder %v2391_v29, 15  ;;  %vm3380_vm7 = vcmp.ge.s32.totalorder %v2381_v26, 4294967295  ;;  %vm759_vm13 = vcmp.lt.s32.totalorder %v2369_v20, 16 }
  0x80   :  { %v3372_v59 = vsel %vm2573_vm12, 4294967295, %v3371_v59  ;;  %vm3373_vm9 = vmmov %vm3367_vm8  ;;  %v299_v13 = vpop.permute.xlu1 %298  ;;  %v297_v14 = vpop.permute.xlu0 %296 }
  0x81   :  { %2080 = vmatpush1.msk.msra.mxu0 %vm3373_vm9, %v104_v54  ;;  %vm3374_vm10 = vmmov %vm3367_vm8  ;;  %vm3377_vm9 = vcmp.lt.s32.totalorder %v2357_v9, 16  ;;  %v2097_v54 = vld [vmem:[%s3295_s1 + $0x20] sm:$0xff] }
  0x82   :  { %2084 = vmatpush1.msk.msra.mxu1 %vm3374_vm10, %v106_v55  ;;  %vm2584_vm1 = vmand %vm2406_vm14, %vm3312_vm5  ;;  %v303_v63 = vsel %vm3377_vm9, %v293_v61, %v295_v60  ;;  %vm3378_vm10 = vcmask 31744   ;;  %vm3386_vm9 = vcmask 1043456  }
  0x83   :  { %2081 = vmatmul.mubr.msk.f32.vlgmr.msra.gmra.mrb[0].mxu0 %vm3378_vm10, %v108_v56  ;;  %vm3379_vm8 = vmmov %vm3378_vm10  ;;  %v330_v6 = vsel %vm2480_vm15, %v303_v63, 0.0  ;;  %vm760_vm15 = vcmp.lt.s32.totalorder %v2365_v18, 16  ;;  %vm3387_vm10 = vcmp.lt.s32.totalorder %v2385_v27, 15 }
  0x84   :  { %2085 = vmatmul.mubr.msk.f32.vlgmr.msra.gmra.mrb[0].mxu1 %vm3379_vm8, %v108_v56  ;;  %vm2599_vm14 = vmand %vm3340_vm11, %vm3380_vm7  ;;  %200 = vmatprep.mubr.f32.mxu0 %v2269_v2  ;;  %vm3383_vm11 = vcmp.ge.s32.totalorder %v2375_v25, 1  ;;  %v519_v34 = vpop.permute.xlu1 %518  ;;  %v517_v35 = vpop.permute.xlu0 %516 }
  0x85   :  { %277 = vmatprep.mubr.f32.mxu1 %v2269_v2  ;;  %vm2616_vm7 = vmand %vm2573_vm12, %vm3383_vm11  ;;  %2089 = vmatprep.subr.msk.mxu0 %vm3386_vm9, %v330_v6  ;;  %vm3392_vm9 = vcmp.ge.s32.totalorder %v2367_v19, 0 }
  0x86   :  { %vm2627_vm5 = vmand %vm2555_vm4, %vm3387_vm10  ;;  %vm3395_vm4 = vcmp.ge.s32.totalorder %v2369_v20, 0 }
  0x87   :  { %vm2635_vm11 = vmand %vm2584_vm1, %vm3313_vm3  ;;  %vm3398_vm1 = vcmp.lt.s32.totalorder %v2357_v9, 16 }
  0x88   :  { %v3391_v11 = vsel %vm2635_vm11, 4294967295, %v3390_v11  ;;  %vm2643_vm8 = vmand %vm3392_vm9, %vm757_vm2  ;;  %v304_v16 = vsel %vm3398_vm1, %v299_v13, %v293_v61  ;;  %vm3401_vm2 = vcmask 31744   ;;  %vm3317_vm11 = vcmp.lt.s32.totalorder %v2357_v9, 15  ;;  %v523_v44 = vpop.permute.xlu1 %522  ;;  %v521_v45 = vpop.permute.xlu0 %520 }
  0x89   :  { %vm2649_vm10 = vmand %vm3395_vm4, %vm759_vm13  ;;  %2082 = vmatmul.mubr.msk.f32.gmra.mrb[2].mxu0 %vm3401_vm2, %v109_v7  ;;  %vm3403_vm13 = vcmp.ge.s32.totalorder %v2365_v18, 0  ;;  %v329_v24 = vsel %vm2500_vm0, %v304_v16, 0.0  ;;  %v527_v36 = vsel %vm3317_vm11, %v517_v35, %v519_v34 }
  0x8a   :  { %vm3399_vm3 = vmmov %vm3398_vm1  ;;  %418 = vmatprep.mubr.f32.mxu0 %v2269_v2 }
  0x8b   :  { %v301_v21 = vsel %vm3399_vm3, %v297_v14, %v299_v13  ;;  %vm3400_vm12 = vmmov %vm3398_vm1  ;;  %vm3406_vm3 = vnez %v3348_v43  ;;  %vm3410_vm1 = vcmask 1043456   ;;  %v3433_v43 = vmov 0 }
  0x8c   :  { %v302_v22 = vsel %vm3400_vm12, %v295_v60, %v297_v14  ;;  %vm3402_vm9 = vmmov %vm3401_vm2  ;;  %v332_v30 = vsel %vm2536_vm6, %v301_v21, 0.0  ;;  %vm3316_vm12 = vcmp.lt.s32.totalorder %v2381_v26, 15  ;;  %2090 = vmatpush1.msk.msra.mxu0 %vm3410_vm1, %v329_v24  ;;  %vm3412_vm2 = vcmp.ge.s32.totalorder %v2391_v29, 1  ;;  %v743_v56 = vpop.permute.xlu1 %742  ;;  %v741_v57 = vpop.permute.xlu0 %740 }
  0x8d   :  { %2086 = vmatmul.mubr.msk.f32.gmra.mrb[2].mxu1 %vm3402_vm9, %v109_v7  ;;  %vm2664_vm4 = vmand %vm3403_vm13, %vm760_vm15  ;;  %v331_v28 = vsel %vm3406_vm3, %v302_v22, 0.0  ;;  %vm3407_vm15 = vcmp.ge.s32.totalorder %v2385_v27, 1  ;;  %vm3416_vm3 = vcmp.ge.s32.totalorder %v2381_v26, 1 }
  0x8e   :  { %v3405_v23 = vsel %vm2664_vm4, 4294967295, %v3404_v23  ;;  %495 = vmatprep.mubr.f32.mxu1 %v2269_v2  ;;  %vm2684_vm0 = vmand %vm2643_vm8, %vm3407_vm15 }
  0x8f   :  { %vm3411_vm6 = vmmov %vm3410_vm1 }
  0x90   :  { %2093 = vmatprep.subr.msk.mxu1 %vm3411_vm6, %v332_v30  ;;  %vm2694_vm9 = vmand %vm2649_vm10, %vm3412_vm2  ;;  %v747_v6 = vpop.permute.xlu1 %746  ;;  %v745_v7 = vpop.permute.xlu0 %744 }
  0x91   :  { %vm3415_vm13 = vmmov %vm3410_vm1  ;;  %vm3417_vm1 = vcmask 31744  }
  0x92   :  { %2094 = vmatpush1.msk.msra.mxu1 %vm3415_vm13, %v331_v28  ;;  %vm768_vm15 = vmand %vm2664_vm4, %vm3416_vm3  ;;  %2091 = vmatmul.mubr.msk.f32.vlgmr.msra.gmra.mrb[0].mxu0 %vm3417_vm1, %v2087_v31  ;;  %vm3421_vm13 = vnez %v3370_v58  ;;  %vm3422_vm3 = vcmp.lt.s32.totalorder %v2375_v25, 17 }
  0x93   :  { %vm3418_vm6 = vmmov %vm3417_vm1  ;;  %v554_v38 = vsel %vm3421_vm13, %v527_v36, 0.0  ;;  %424 = vmatprep.mubr.f32.mxu0 %v2269_v2 }
  0x94   :  { %2095 = vmatmul.mubr.msk.f32.vlgmr.msra.gmra.mrb[0].mxu1 %vm3418_vm6, %v2087_v31  ;;  %vm2711_vm2 = vmand %vm2599_vm14, %vm3316_vm12  ;;  %vm3425_vm14 = vcmask 1043456   ;;  %vm3426_vm6 = vcmp.lt.s32.totalorder %v2385_v27, 17  ;;  %vm3429_vm12 = vcmp.lt.s32.totalorder %v2391_v29, 17  ;;  %v1172_v30 = vpop.permute.xlu0 %1171  ;;  %v1174_v31 = vpop.permute.xlu1 %1173 }
  0x95   :  { %501 = vmatprep.mubr.f32.mxu1 %v2269_v2  ;;  %vm2726_vm1 = vmand %vm2616_vm7, %vm3422_vm3  ;;  %2099 = vmatprep.subr.msk.mxu0 %vm3425_vm14, %v554_v38  ;;  %vm3432_vm7 = vcmp.lt.s32.totalorder %v2381_v26, 17 }
  0x96   :  { %vm2735_vm13 = vmand %vm2684_vm0, %vm3426_vm6  ;;  %vm3435_vm0 = vcmp.ge.s32.totalorder %v2381_v26, 0  ;;  %vm3441_vm6 = vcmask 31744  }
  0x97   :  { %vm2743_vm11 = vmand %vm2694_vm9, %vm3429_vm12  ;;  %vm3438_vm12 = vcmp.lt.s32.totalorder %v2357_v9, 15  ;;  %2092 = vmatmul.mubr.msk.f32.gmra.mrb[2].mxu0 %vm3441_vm6, %v2088_v39 }
  0x98   :  { %v3431_v42 = vsel %vm2743_vm11, 4294967295, %v3430_v42  ;;  %vm2749_vm3 = vmand %vm768_vm15, %vm3432_vm7  ;;  %v528_v47 = vsel %vm3438_vm12, %v523_v44, %v517_v35  ;;  %642 = vmatprep.mubr.f32.mxu0 %v2269_v2  ;;  %v1176_v36 = vpop.permute.xlu0 %1175  ;;  %v1178_v37 = vpop.permute.xlu1 %1177 }
  0x99   :  { %v3434_v43 = vsel %vm2749_vm3, 4294967295, %v3433_v43  ;;  %vm2757_vm14 = vmand %vm2664_vm4, %vm3435_vm0  ;;  %vm3443_vm3 = vcmp.ge.s32.totalorder %v2385_v27, 4294967295  ;;  %v553_v51 = vsel %vm2627_vm5, %v528_v47, 0.0  ;;  %vm3448_vm5 = vnez %v3372_v59  ;;  %v2098_v59 = vld [vmem:[%s3295_s1 + $0x28] sm:$0xff] }
  0x9a   :  { %vm3439_vm9 = vmmov %vm3438_vm12  ;;  %vm3446_vm12 = vnez %v3391_v11  ;;  %vm3455_vm4 = vcmp.ge.s32.totalorder %v2375_v25, 4294967295 }
  0x9b   :  { %v525_v48 = vsel %vm3439_vm9, %v521_v45, %v523_v44  ;;  %vm3440_vm15 = vmmov %vm3439_vm9  ;;  %v2117_v44 = vld [vmem:[%s3295_s1 + $0x40] sm:$0xff] }
  0x9c   :  { %v526_v49 = vsel %vm3440_vm15, %v519_v34, %v521_v45  ;;  %vm3442_vm7 = vmmov %vm3441_vm6  ;;  %v556_v53 = vsel %vm2711_vm2, %v525_v48, 0.0  ;;  %vm3449_vm6 = vcmask 1043456   ;;  %vm3451_vm2 = vcmp.lt.s32.totalorder %v2381_v26, 16  ;;  %v2108_v34 = vld [vmem:[%s3295_s1 + $0x38] sm:$0xff]  ;;  %v1388_v47 = vpop.permute.xlu0 %1387  ;;  %v1390_v48 = vpop.permute.xlu1 %1389 }
  0x9d   :  { %2096 = vmatmul.mubr.msk.f32.gmra.mrb[2].mxu1 %vm3442_vm7, %v2088_v39  ;;  %vm2773_vm0 = vmand %vm2643_vm8, %vm3443_vm3  ;;  %v555_v52 = vsel %vm3446_vm12, %v526_v49, 0.0  ;;  %vm3447_vm3 = vcmp.ge.s32.totalorder %v2375_v25, 0  ;;  %2100 = vmatpush1.msk.msra.mxu0 %vm3449_vm6, %v553_v51  ;;  %v2118_v49 = vld [vmem:[%s3295_s1 + $0x48] sm:$0xff] }
  0x9e   :  { %719 = vmatprep.mubr.f32.mxu1 %v2269_v2  ;;  %vm969_vm15 = vmand %vm3448_vm5, %vm3447_vm3 }
  0x9f   :  { %vm3450_vm7 = vmmov %vm3449_vm6 }
  0xa0   :  { %2103 = vmatprep.subr.msk.mxu1 %vm3450_vm7, %v556_v53  ;;  %vm2799_vm12 = vmand %vm2757_vm14, %vm3451_vm2  ;;  %vm3457_vm7 = vcmask 31744   ;;  %vm3459_vm14 = vcmp.lt.s32.totalorder %v2375_v25, 16  ;;  %v1392_v53 = vpop.permute.xlu0 %1391 }
  0xa1   :  { %vm3454_vm9 = vmmov %vm3449_vm6  ;;  %vm3456_vm6 = vcmp.lt.s32.totalorder %v2357_v9, 1  ;;  %2101 = vmatmul.mubr.msk.f32.vlgmr.msra.gmra.mrb[0].mxu0 %vm3457_vm7, %v2097_v54  ;;  %v987_v32 = vsel %vm2799_vm12, %v2315_v3, 0.0 }
  0xa2   :  { %2104 = vmatpush1.msk.msra.mxu1 %vm3454_vm9, %v555_v52  ;;  %vm1185_vm3 = vmand %vm3448_vm5, %vm3455_vm4  ;;  %v751_v58 = vsel %vm3456_vm6, %v741_v57, %v743_v56  ;;  %648 = vmatprep.mubr.f32.mxu0 %v2269_v2  ;;  %vm3462_vm4 = vcmp.ge.s32.totalorder %v2385_v27, 0 }
  0xa3   :  { %vm3458_vm11 = vmmov %vm3457_vm7  ;;  %v782_v61 = vsel %vm2726_vm1, %v751_v58, 0.0  ;;  %vm3465_vm1 = vcmp.lt.s32.totalorder %v2375_v25, 15 }
  0xa4   :  { %2105 = vmatmul.mubr.msk.f32.vlgmr.msra.gmra.mrb[0].mxu1 %vm3458_vm11, %v2097_v54  ;;  %vm2814_vm2 = vmand %vm969_vm15, %vm3459_vm14  ;;  %2109 = vmatprep.subr.msk.mxu0 %vm3454_vm9, %v782_v61  ;;  %vm3468_vm15 = vcmp.ge.s32.totalorder %v2391_v29, 0  ;;  %vm3477_vm9 = vcmp.lt.s32.totalorder %v2357_v9, 1  ;;  %v1394_v54 = vpop.permute.xlu1 %1393 }
  0xa5   :  { %725 = vmatprep.mubr.f32.mxu1 %v2269_v2  ;;  %vm2829_vm11 = vmand %vm2643_vm8, %vm3462_vm4  ;;  %vm3471_vm8 = vcmp.lt.s32.totalorder %v2385_v27, 15  ;;  %vm1400_vm4 = vcmp.ge.s32.totalorder %v2367_v19, 4294967295  ;;  %v752_v11 = vsel %vm3477_vm9, %v747_v6, %v741_v57  ;;  %v985_v14 = vsel %vm2814_vm2, %v2319_v4, 0.0  ;;  %v2107_v4 = vld [vmem:[%s3295_s1 + $0x30] sm:$0xff] }
  0xa6   :  { %vm2836_vm5 = vmand %vm1185_vm3, %vm3465_vm1  ;;  %vm3474_vm3 = vcmp.ge.s32.totalorder %v2391_v29, 4294967295  ;;  %v781_v16 = vsel %vm2735_vm13, %v752_v11, 0.0  ;;  %vm3487_vm2 = vcmp.lt.s32.totalorder %v2391_v29, 16  ;;  %vm1404_vm13 = vcmp.lt.s32.totalorder %v2367_v19, 15 }
  0xa7   :  { %vm2844_vm6 = vmand %vm2649_vm10, %vm3468_vm15  ;;  %vm3480_vm15 = vcmask 31744  }
  0xa8   :  { %vm2852_vm7 = vmand %vm2773_vm0, %vm3471_vm8  ;;  %2102 = vmatmul.mubr.msk.f32.gmra.mrb[2].mxu0 %vm3480_vm15, %v2098_v59 }
  0xa9   :  { %vm2860_vm14 = vmand %vm2649_vm10, %vm3474_vm3  ;;  %vm3482_vm10 = vcmp.lt.s32.totalorder %v2385_v27, 16  ;;  %870 = vmatprep.mubr.f32.mxu0 %v2269_v2 }
  0xaa   :  { %vm3478_vm1 = vmmov %vm3477_vm9  ;;  %vm3485_vm9 = vnez %v3431_v42 }
  0xab   :  { %v749_v12 = vsel %vm3478_vm1, %v745_v7, %v747_v6  ;;  %vm3479_vm0 = vmmov %vm3478_vm1  ;;  %vm3486_vm1 = vnez %v3434_v43  ;;  %v1616_v6 = vpop.permute.xlu0 %1615 }
  0xac   :  { %v750_v13 = vsel %vm3479_vm0, %v743_v56, %v745_v7  ;;  %vm3481_vm8 = vmmov %vm3480_vm15  ;;  %v784_v22 = vsel %vm3486_vm1, %v749_v12, 0.0  ;;  %vm3490_vm0 = vcmask 1043456   ;;  %v1618_v7 = vpop.permute.xlu1 %1617 }
  0xad   :  { %2106 = vmatmul.mubr.msk.f32.gmra.mrb[2].mxu1 %vm3481_vm8, %v2098_v59  ;;  %vm2880_vm3 = vmand %vm2829_vm11, %vm3482_vm10  ;;  %v783_v21 = vsel %vm3485_vm9, %v750_v13, 0.0  ;;  %2110 = vmatpush1.msk.msra.mxu0 %vm3490_vm0, %v781_v16  ;;  %vm3492_vm8 = vcmp.ge.s32.totalorder %v2381_v26, 4294967295  ;;  %vm3493_vm10 = vnez %v3405_v23  ;;  %v2127_v59 = vld [vmem:[%s3295_s1 + $0x50] sm:$0xff] }
  0xae   :  { %947 = vmatprep.mubr.f32.mxu1 %v2269_v2  ;;  %vm2899_vm11 = vmand %vm2844_vm6, %vm3487_vm2  ;;  %vm3498_vm2 = vcmp.lt.s32.totalorder %v2391_v29, 15  ;;  %v984_v33 = vsel %vm2880_vm3, %v2307_v1, 0.0  ;;  %vm3505_vm3 = vcmp.lt.s32.totalorder %v2381_v26, 15 }
  0xaf   :  { %vm3491_vm15 = vmmov %vm3490_vm0  ;;  %v986_v3 = vsel %vm2899_vm11, %v2302_v0, 0.0 }
  0xb0   :  { %2113 = vmatprep.subr.msk.mxu1 %vm3491_vm15, %v784_v22  ;;  %vm2910_vm9 = vmand %vm3493_vm10, %vm3492_vm8  ;;  %vm1401_vm15 = vcmp.ge.s32.totalorder %v2363_v17, 4294967295  ;;  %vm1405_vm8 = vcmp.lt.s32.totalorder %v2363_v17, 15  ;;  %vm3501_vm10 = vcmask 31744   ;;  %v1622_v15 = vpop.permute.xlu1 %1621 }
  0xb1   :  { %vm3496_vm1 = vmmov %vm3490_vm0  ;;  %2111 = vmatmul.mubr.msk.f32.vlgmr.msra.gmra.mrb[0].mxu0 %vm3501_vm10, %v2107_v4 }
  0xb2   :  { %2114 = vmatpush1.msk.msra.mxu1 %vm3496_vm1, %v783_v21  ;;  %vm3497_vm6 = vmmov %vm3490_vm0  ;;  %vm1179_vm1 = vcmp.lt.s32.totalorder %v2357_v9, 127  ;;  %876 = vmatprep.mubr.f32.mxu0 %v2269_v2 }
  0xb3   :  { %2119 = vmatprep.subr.msk.mxu0 %vm3497_vm6, %v985_v14  ;;  %vm2923_vm0 = vmand %vm2860_vm14, %vm3498_vm2  ;;  %2123 = vmatprep.subr.msk.mxu1 %vm3497_vm6, %v987_v32  ;;  %v1182_v35 = vsel %vm1179_vm1, %v1172_v30, %v1174_v31  ;;  %v1181_v17 = vsel %vm1179_vm1, %v1174_v31, %v1176_v36  ;;  %v1180_v39 = vsel %vm1179_vm1, %v1176_v36, %v1178_v37  ;;  %v1620_v14 = vpop.permute.xlu0 %1619 }
  0xb4   :  { %vm3502_vm12 = vmmov %vm3501_vm10  ;;  %v1183_v40 = vsel %vm1179_vm1, %v1178_v37, %v1172_v30  ;;  %v1201_v42 = vsel %vm2836_vm5, %v1181_v17, 0.0  ;;  %vm3519_vm1 = vcmp.ge.s32.totalorder %v2375_v25, 1  ;;  %vm3520_vm5 = vcmask 1043456   ;;  %v2137_v30 = vld [vmem:[%s3295_s1 + $0x60] sm:$0xff] }
  0xb5   :  { %2115 = vmatmul.mubr.msk.f32.vlgmr.msra.gmra.mrb[0].mxu1 %vm3502_vm12, %v2107_v4  ;;  %vm2942_vm14 = vmand %vm1400_vm4, %vm1404_vm13  ;;  %vm1403_vm4 = vcmp.ge.s32.totalorder %v2365_v18, 4294967295  ;;  %vm1407_vm13 = vcmp.lt.s32.totalorder %v2365_v18, 15  ;;  %vm3512_vm12 = vcmp.ge.s32.totalorder %v2385_v27, 1  ;;  %v1200_v18 = vsel %vm2852_vm7, %v1182_v35, 0.0 }
  0xb6   :  { %953 = vmatprep.mubr.f32.mxu1 %v2269_v2  ;;  %vm2955_vm11 = vmand %vm2910_vm9, %vm3505_vm3  ;;  %v1202_v46 = vsel %vm2923_vm0, %v1180_v39, 0.0 }
  0xb7   :  { %vm3508_vm2 = vmmov %vm3497_vm6  ;;  %vm3515_vm6 = vcmask 31744   ;;  %v1203_v43 = vsel %vm2955_vm11, %v1183_v40, 0.0 }
  0xb8   :  { %2120 = vmatpush1.msk.msra.mxu0 %vm3508_vm2, %v984_v33  ;;  %vm2965_vm10 = vmand %vm1401_vm15, %vm1405_vm8  ;;  %vm1402_vm15 = vcmp.ge.s32.totalorder %v2369_v20, 4294967295  ;;  %vm1406_vm8 = vcmp.lt.s32.totalorder %v2369_v20, 15  ;;  %v1832_v33 = vpop.permute.xlu0 %1831 }
  0xb9   :  { %vm3511_vm9 = vmmov %vm3508_vm2  ;;  %2112 = vmatmul.mubr.msk.f32.gmra.mrb[2].mxu0 %vm3515_vm6, %v2108_v34  ;;  %2129 = vmatprep.subr.msk.mxu0 %vm3520_vm5, %v1201_v42  ;;  %v2157_v42 = vld [vmem:[%s3295_s1 + $0x80] sm:$0xff] }
  0xba   :  { %2124 = vmatpush1.msk.msra.mxu1 %vm3511_vm9, %v986_v3  ;;  %vm2976_vm3 = vmand %vm2942_vm14, %vm3512_vm12  ;;  %1073 = vmatprep.mubr.f32.mxu0 %v2269_v2  ;;  %vm3524_vm12 = vcmp.ge.s32.totalorder %v2381_v26, 1  ;;  %v1834_v3 = vpop.permute.xlu1 %1833 }
  0xbb   :  { %vm3516_vm2 = vmmov %vm3515_vm6 }
  0xbc   :  { %2116 = vmatmul.mubr.msk.f32.gmra.mrb[2].mxu1 %vm3516_vm2, %v2108_v34  ;;  %vm2994_vm9 = vmand %vm1403_vm4, %vm1407_vm13  ;;  %v2138_v34 = vld [vmem:[%s3295_s1 + $0x68] sm:$0xff]  ;;  %v1836_v35 = vpop.permute.xlu0 %1835 }
  0xbd   :  { %1150 = vmatprep.mubr.f32.mxu1 %v2269_v2  ;;  %vm1413_vm4 = vmand %vm2965_vm10, %vm3519_vm1  ;;  %vm1395_vm1 = vcmp.lt.s32.totalorder %v2357_v9, 113 }
  0xbe   :  { %vm3521_vm13 = vmmov %vm3520_vm5  ;;  %v1398_v52 = vsel %vm1395_vm1, %v1388_v47, %v1390_v48  ;;  %v1397_v55 = vsel %vm1395_vm1, %v1390_v48, %v1392_v53  ;;  %v1396_v57 = vsel %vm1395_vm1, %v1392_v53, %v1394_v54  ;;  %v1399_v58 = vsel %vm1395_vm1, %v1394_v54, %v1388_v47  ;;  %v1838_v36 = vpop.permute.xlu1 %1837 }
  0xbf   :  { %2133 = vmatprep.subr.msk.mxu1 %vm3521_vm13, %v1203_v43  ;;  %vm3019_vm11 = vmand %vm1402_vm15, %vm1406_vm8  ;;  %vm3526_vm15 = vcmp.lt.s32.totalorder %v2375_v25, 17  ;;  %vm3544_vm1 = vcmask 1043456   ;;  %v2158_v43 = vld [vmem:[%s3295_s1 + $0x88] sm:$0xff] }
  0xc0   :  { %vm1415_vm7 = vmand %vm2994_vm9, %vm3524_vm12  ;;  %2125 = vmatmul.mubr.msk.f32.vlgmr.msra.gmra.mrb[0].mxu1 %vm3516_vm2, %v2117_v44 }
  0xc1   :  { %vm3525_vm6 = vmmov %vm3516_vm2  ;;  %1156 = vmatprep.mubr.f32.mxu1 %v2269_v2  ;;  %vm3535_vm2 = vcmp.lt.s32.totalorder %v2385_v27, 17  ;;  %v47_v47 = vpop.permute.xlu0 %46 }
  0xc2   :  { %2121 = vmatmul.mubr.msk.f32.vlgmr.msra.gmra.mrb[0].mxu0 %vm3525_vm6, %v2117_v44  ;;  %vm3034_vm8 = vmand %vm1413_vm4, %vm3526_vm15  ;;  %vm3532_vm4 = vcmp.lt.s32.totalorder %v2381_v26, 17  ;;  %v42_v12 = vpop.permute.xlu1 %41 }
  0xc3   :  { %vm3529_vm0 = vmmov %vm3520_vm5  ;;  %1079 = vmatprep.mubr.f32.mxu0 %v2269_v2  ;;  %vm3530_vm5 = vcmp.ge.s32.totalorder %v2391_v29, 1  ;;  %v1429_v60 = vsel %vm3034_vm8, %v1397_v55, 0.0 }
  0xc4   :  { %2130 = vmatpush1.msk.msra.mxu0 %vm3529_vm0, %v1200_v18  ;;  %vm1414_vm13 = vmand %vm3019_vm11, %vm3530_vm5 }
  0xc5   :  { %vm3531_vm12 = vmmov %vm3529_vm0  ;;  %vm3538_vm0 = vcmask 31744   ;;  %2139 = vmatprep.subr.msk.mxu0 %vm3544_vm1, %v1429_v60 }
  0xc6   :  { %2134 = vmatpush1.msk.msra.mxu1 %vm3531_vm12, %v1202_v46  ;;  %vm3051_vm6 = vmand %vm1415_vm7, %vm3532_vm4  ;;  %2122 = vmatmul.mubr.msk.f32.gmra.mrb[2].mxu0 %vm3538_vm0, %v2118_v49  ;;  %vm3540_vm7 = vcmp.lt.s32.totalorder %v2391_v29, 17  ;;  %vm3546_vm4 = vcmp.ge.s32.totalorder %v2385_v27, 0 }
  0xc7   :  { %vm3059_vm15 = vmand %vm2976_vm3, %vm3535_vm2  ;;  %v1431_v61 = vsel %vm3051_vm6, %v1399_v58, 0.0  ;;  %1289 = vmatprep.mubr.f32.mxu0 %v2269_v2  ;;  %vm3543_vm3 = vcmp.ge.s32.totalorder %v2375_v25, 0  ;;  %vm3549_vm2 = vcmp.ge.s32.totalorder %v2381_v26, 0 }
  0xc8   :  { %vm3539_vm5 = vmmov %vm3538_vm0  ;;  %v1428_v62 = vsel %vm3059_vm15, %v1398_v52, 0.0 }
  0xc9   :  { %2126 = vmatmul.mubr.msk.f32.gmra.mrb[2].mxu1 %vm3539_vm5, %v2118_v49  ;;  %vm3071_vm12 = vmand %vm1414_vm13, %vm3540_vm7  ;;  %vm1623_vm7 = vcmp.lt.s32.totalorder %v2357_v9, 112 }
  0xca   :  { %1366 = vmatprep.mubr.f32.mxu1 %v2269_v2  ;;  %vm1629_vm13 = vmand %vm2965_vm10, %vm3543_vm3  ;;  %v1430_v5 = vsel %vm3071_vm12, %v1396_v57, 0.0  ;;  %2131 = vmatmul.mubr.msk.f32.vlgmr.msra.gmra.mrb[0].mxu0 %vm3538_vm0, %v2127_v59  ;;  %vm3551_vm3 = vcmp.lt.s32.totalorder %v2375_v25, 16  ;;  %v1626_v13 = vsel %vm1623_vm7, %v1616_v6, %v1618_v7  ;;  %v1625_v16 = vsel %vm1623_vm7, %v1618_v7, %v1620_v14 }
  0xcb   :  { %vm3545_vm8 = vmmov %vm3544_vm1  ;;  %1295 = vmatprep.mubr.f32.mxu0 %v2269_v2  ;;  %v1624_v22 = vsel %vm1623_vm7, %v1620_v14, %v1622_v15  ;;  %v1627_v4 = vsel %vm1623_vm7, %v1622_v15, %v1616_v6  ;;  %vm3569_vm7 = vcmask 1043456  }
  0xcc   :  { %2143 = vmatprep.subr.msk.mxu1 %vm3545_vm8, %v1431_v61  ;;  %vm3100_vm6 = vmand %vm2942_vm14, %vm3546_vm4 }
  0xcd   :  { %vm1631_vm15 = vmand %vm2994_vm9, %vm3549_vm2 }
  0xce   :  { %vm3550_vm5 = vmmov %vm3538_vm0 }
  0xcf   :  { %2135 = vmatmul.mubr.msk.f32.vlgmr.msra.gmra.mrb[0].mxu1 %vm3550_vm5, %v2127_v59  ;;  %vm3115_vm1 = vmand %vm1629_vm13, %vm3551_vm3  ;;  %vm3557_vm13 = vcmp.lt.s32.totalorder %v2381_v26, 16  ;;  %vm3560_vm5 = vcmp.lt.s32.totalorder %v2385_v27, 16 }
  0xd0   :  { %vm3554_vm12 = vmmov %vm3545_vm8  ;;  %vm3555_vm8 = vcmp.ge.s32.totalorder %v2391_v29, 0  ;;  %1372 = vmatprep.mubr.f32.mxu1 %v2269_v2  ;;  %v1645_v24 = vsel %vm3115_vm1, %v1625_v16, 0.0 }
  0xd1   :  { %2140 = vmatpush1.msk.msra.mxu0 %vm3554_vm12, %v1428_v62  ;;  %vm1630_vm4 = vmand %vm3019_vm11, %vm3555_vm8 }
  0xd2   :  { %vm3556_vm2 = vmmov %vm3554_vm12  ;;  %vm3563_vm12 = vcmask 31744   ;;  %2149 = vmatprep.subr.msk.mxu0 %vm3569_vm7, %v1645_v24 }
  0xd3   :  { %2144 = vmatpush1.msk.msra.mxu1 %vm3556_vm2, %v1430_v5  ;;  %vm3132_vm0 = vmand %vm1631_vm15, %vm3557_vm13  ;;  %2132 = vmatmul.mubr.msk.f32.gmra.mrb[2].mxu0 %vm3563_vm12, %v2128_v10  ;;  %vm3565_vm15 = vcmp.lt.s32.totalorder %v2391_v29, 16  ;;  %vm3571_vm13 = vcmp.ge.s32.totalorder %v2385_v27, 4294967295 }
  0xd4   :  { %vm3140_vm3 = vmand %vm3100_vm6, %vm3560_vm5  ;;  %v1647_v28 = vsel %vm3132_vm0, %v1627_v4, 0.0  ;;  %1517 = vmatprep.mubr.f32.mxu0 %v2269_v2  ;;  %vm3568_vm6 = vcmp.ge.s32.totalorder %v2375_v25, 4294967295 }
  0xd5   :  { %vm3564_vm8 = vmmov %vm3563_vm12  ;;  %v1644_v31 = vsel %vm3140_vm3, %v1626_v13, 0.0 }
  0xd6   :  { %2136 = vmatmul.mubr.msk.f32.gmra.mrb[2].mxu1 %vm3564_vm8, %v2128_v10  ;;  %vm3152_vm2 = vmand %vm1630_vm4, %vm3565_vm15 }
  0xd7   :  { %1594 = vmatprep.mubr.f32.mxu1 %v2269_v2  ;;  %vm1845_vm4 = vmand %vm2965_vm10, %vm3568_vm6  ;;  %v1646_v23 = vsel %vm3152_vm2, %v1624_v22, 0.0  ;;  %vm3574_vm10 = vcmp.ge.s32.totalorder %v2381_v26, 4294967295 }
  0xd8   :  { %vm3570_vm1 = vmmov %vm3569_vm7 }
  0xd9   :  { %2153 = vmatprep.subr.msk.mxu1 %vm3570_vm1, %v1647_v28  ;;  %vm3181_vm0 = vmand %vm2942_vm14, %vm3571_vm13  ;;  %vm3577_vm14 = vcmp.lt.s32.totalorder %v2375_v25, 15  ;;  %vm3586_vm13 = vcmp.lt.s32.totalorder %v2385_v27, 15 }
  0xda   :  { %vm1847_vm5 = vmand %vm2994_vm9, %vm3574_vm10  ;;  %vm3581_vm9 = vcmp.ge.s32.totalorder %v2391_v29, 4294967295 }
  0xdb   :  { %vm3575_vm3 = vmmov %vm3564_vm8  ;;  %vm1839_vm8 = vcmp.lt.s32.totalorder %v2357_v9, 111 }
  0xdc   :  { %2141 = vmatmul.mubr.msk.f32.vlgmr.msra.gmra.mrb[0].mxu0 %vm3575_vm3, %v2137_v30  ;;  %vm3576_vm12 = vmmov %vm3575_vm3  ;;  %v1842_v19 = vsel %vm1839_vm8, %v1832_v33, %v1834_v3  ;;  %v1840_v37 = vsel %vm1839_vm8, %v1836_v35, %v1838_v36  ;;  %v1843_v38 = vsel %vm1839_vm8, %v1838_v36, %v1832_v33 }
  0xdd   :  { %2145 = vmatmul.mubr.msk.f32.vlgmr.msra.gmra.mrb[0].mxu1 %vm3576_vm12, %v2137_v30  ;;  %vm3196_vm15 = vmand %vm1845_vm4, %vm3577_vm14  ;;  %1523 = vmatprep.mubr.f32.mxu0 %v2269_v2  ;;  %vm3583_vm4 = vcmp.lt.s32.totalorder %v2381_v26, 15  ;;  %v1841_v26 = vsel %vm1839_vm8, %v1834_v3, %v1836_v35 }
  0xde   :  { %vm3580_vm2 = vmmov %vm3570_vm1  ;;  %1600 = vmatprep.mubr.f32.mxu1 %v2269_v2  ;;  %v1861_v17 = vsel %vm3196_vm15, %v1841_v26, 0.0 }
  0xdf   :  { %2150 = vmatpush1.msk.msra.mxu0 %vm3580_vm2, %v1644_v31  ;;  %vm1846_vm6 = vmand %vm3019_vm11, %vm3581_vm9 }
  0xe0   :  { %vm3582_vm7 = vmmov %vm3570_vm1 }
  0xe1   :  { %2154 = vmatpush1.msk.msra.mxu1 %vm3582_vm7, %v1646_v23  ;;  %vm3213_vm1 = vmand %vm1847_vm5, %vm3583_vm4  ;;  %vm3590_vm5 = vcmp.lt.s32.totalorder %v2391_v29, 15  ;;  %v2147_v29 = vld [vmem:[%s3295_s1 + $0x70] sm:$0xff] }
  0xe2   :  { %vm3221_vm10 = vmand %vm3181_vm0, %vm3586_vm13  ;;  %2146 = vmatmul.mubr.msk.f32.gmra.mrb[2].mxu1 %vm3575_vm3, %v2138_v34  ;;  %v1863_v39 = vsel %vm3213_vm1, %v1843_v38, 0.0 }
  0xe3   :  { %vm3589_vm11 = vmmov %vm3575_vm3  ;;  %1810 = vmatprep.mubr.f32.mxu1 %v2269_v2  ;;  %v1860_v40 = vsel %vm3221_vm10, %v1842_v19, 0.0 }
  0xe4   :  { %2142 = vmatmul.mubr.msk.f32.gmra.mrb[2].mxu0 %vm3589_vm11, %v2138_v34  ;;  %vm3233_vm12 = vmand %vm1846_vm6, %vm3590_vm5 }
  0xe5   :  { %1733 = vmatprep.mubr.f32.mxu0 %v2269_v2  ;;  %vm3593_vm0 = vmmov %vm3580_vm2  ;;  %v1862_v9 = vsel %vm3233_vm12, %v1840_v37, 0.0 }
  0xe6   :  { %2159 = vmatprep.subr.msk.mxu0 %vm3593_vm0, %v1861_v17  ;;  %vm3594_vm8 = vmmov %vm3593_vm0 }
  0xe7   :  { %2163 = vmatprep.subr.msk.mxu1 %vm3594_vm8, %v1863_v39  ;;  %vm3595_vm14 = vmmov %vm3575_vm3 }
  0xe8   :  { %2151 = vmatmul.mubr.msk.f32.vlgmr.msra.gmra.mrb[0].mxu0 %vm3595_vm14, %v2147_v29  ;;  %vm3596_vm15 = vmmov %vm3575_vm3 }
  0xe9   :  { %2155 = vmatmul.mubr.msk.f32.vlgmr.msra.gmra.mrb[0].mxu1 %vm3596_vm15, %v2147_v29  ;;  %vm3597_vm2 = vmmov %vm3593_vm0  ;;  %1739 = vmatprep.mubr.f32.mxu0 %v2269_v2 }
  0xea   :  { %2160 = vmatpush1.msk.msra.mxu0 %vm3597_vm2, %v1860_v40  ;;  %1816 = vmatprep.mubr.f32.mxu1 %v2269_v2  ;;  %vm3598_vm9 = vmmov %vm3593_vm0 }
  0xeb   :  { %2164 = vmatpush1.msk.msra.mxu1 %vm3598_vm9, %v1862_v9  ;;  %vm3599_vm6 = vmmov %vm3575_vm3 }
  0xec   :  { %2152 = vmatmul.mubr.msk.f32.gmra.mrb[2].mxu0 %vm3599_vm6, %v2148_v41  ;;  %vm3600_vm7 = vmmov %vm3575_vm3 }
  0xed   :  { %2156 = vmatmul.mubr.msk.f32.gmra.mrb[2].mxu1 %vm3600_vm7, %v2148_v41  ;;  %1949 = vmatprep.mubr.f32.mxu0 %v2269_v2  ;;  %vm3601_vm4 = vmmov %vm3575_vm3 }
  0xee   :  { %2026 = vmatprep.mubr.f32.mxu1 %v2269_v2  ;;  %vm3602_vm1 = vmmov %vm3575_vm3 }
  0xef   :  { %vm3603_vm13 = vmmov %vm3602_vm1 }
  0xf0   :  { %2161 = vmatmul.mubr.msk.f32.vlgmr.msra.gmra.mrb[0].mxu0 %vm3601_vm4, %v2157_v42  ;;  %vm3604_vm10 = vmmov %vm3602_vm1 }
  0xf1   :  { %2165 = vmatmul.mubr.msk.f32.vlgmr.msra.gmra.mrb[0].mxu1 %vm3602_vm1, %v2157_v42  ;;  %1955 = vmatprep.mubr.f32.mxu0 %v2269_v2 }
  0xf2   :  { %2032 = vmatprep.mubr.f32.mxu1 %v2269_v2 }
  0xf4   :  { %2162 = vmatmul.mubr.msk.f32.gmra.mrb[2].mxu0 %vm3603_vm13, %v2158_v43 }
  0xf5   :  { %2166 = vmatmul.mubr.msk.f32.gmra.mrb[2].mxu1 %vm3604_vm10, %v2158_v43 }
 0x1c3   :  { %v1951_v44 = vpop.f32.mrb[0].mxu0 }
 0x1c4   :  { %v2028_v18 = vpop.f32.mrb[0].mxu1  ;;  %v1953_v45 = vpop.f32.mrb[1].mxu0  ;;  %v2167_v15 = vadd.f32 %v1951_v44, %v42_v12 }
 0x1c5   :  { %v2030_v46 = vpop.f32.mrb[1].mxu1  ;;  %v2171_v13 = vadd.f32 %v2028_v18, %v42_v12  ;;  %v2168_v21 = vadd.f32 %v1953_v45, %v42_v12 }
 0x1c6   :  { %v2172_v24 = vadd.f32 %v2030_v46, %v42_v12 }
 0x1c7   :  { %v1957_v20 = vpop.f32.mrb[2].mxu0 }
 0x1c8   :  { %v2034_v48 = vpop.f32.mrb[2].mxu1  ;;  %v2169_v50 = vadd.f32 %v1957_v20, %v47_v47  ;;  %v1959_v51 = vpop.f32.mrb[3].mxu0 }
 0x1c9   :  { %v2173_v49 = vadd.f32 %v2034_v48, %v47_v47  ;;  %v2036_v52 = vpop.f32.mrb[3].mxu1  ;;  %v2170_v2 = vadd.f32 %v1959_v51, %v47_v47 }
 0x1ca   :  { %v2174_v53 = vadd.f32 %v2036_v52, %v47_v47  ;;  %v2047_v55 = vsub.f32 0.0, %v2169_v50 }
 0x1cb   :  { %v2049_v54 = vsub.f32 0.0, %v2173_v49  ;;  %v2048_v56 = vsub.f32 0.0, %v2170_v2 }
 0x1cc   :  { %v2050_v57 = vsub.f32 0.0, %v2174_v53  ;;  %v2051_v60 = vmul.f32 1.442695, %v2047_v55 }
 0x1cd   :  { %v2055_v58 = vmul.f32 1.442695, %v2049_v54  ;;  %v2053_v61 = vmul.f32 1.442695, %v2048_v56 }
 0x1ce   :  { %v2057_v59 = vmul.f32 1.442695, %v2050_v57 }
 0x1cf   :  { %2253 = vpow2.f32 %v2055_v58 }
 0x1d0   :  { %2255 = vpow2.f32 %v2051_v60 }
 0x1d1   :  { %2257 = vpow2.f32 %v2053_v61 }
 0x1d2   :  { %2259 = vpow2.f32 %v2057_v59 }
 0x1d9   :  { %v2254_v62 = vpop.eup %2253 }
 0x1da   :  { %v2256_v63 = vpop.eup %2255  ;;  %v2061_v5 = vadd.f32 1.0, %v2254_v62 }
 0x1db   :  { %v2258_v6 = vpop.eup %2257  ;;  %v2059_v7 = vadd.f32 1.0, %v2256_v63 }
 0x1dc   :  { %v2260_v8 = vpop.eup %2259  ;;  %2261 = vrcp.f32 %v2061_v5  ;;  %v2060_v10 = vadd.f32 1.0, %v2258_v6 }
 0x1dd   :  { %2263 = vrcp.f32 %v2059_v7  ;;  %v2062_v11 = vadd.f32 1.0, %v2260_v8 }
 0x1de   :  { %2265 = vrcp.f32 %v2060_v10 }
 0x1df   :  { %2267 = vrcp.f32 %v2062_v11 }
 0x1e6   :  { %v2262_v14 = vpop.eup %2261 }
 0x1e7   :  { %v2264_v16 = vpop.eup %2263  ;;  %v2069_v22 = vmul.f32 %v2262_v14, %v2171_v13 }
 0x1e8   :  { %v2266_v4 = vpop.eup %2265  ;;  %v2067_v28 = vmul.f32 %v2264_v16, %v2167_v15 }
 0x1e9   :  { %v2268_v30 = vpop.eup %2267  ;;  %2073 = vst [vmem:[%s3296_s3 + $0x10] sm:$0xff] %v2069_v22  ;;  %v2068_v31 = vmul.f32 %v2266_v4, %v2168_v21 }
 0x1ea   :  { %2071 = vst [vmem:[%s3296_s3] sm:$0xff] %v2067_v28  ;;  %v2070_v32 = vmul.f32 %v2268_v30, %v2172_v24 }
 0x1eb   :  { %2072 = vst [vmem:[%s3296_s3 + $0x8] sm:$0xff] %v2068_v31 }
 0x1ec   :  { %2074 = vst [vmem:[%s3296_s3 + $0x18] sm:$0xff] %v2070_v32 }

</bundles_post_ra>
